<compile_context>
chip_gen: v6e
topology: v6e:2x2x1
jax: 0.10.0
libtpu: 0.0.40
codegen_flags: <defaults>
</compile_context>

<pallas_src>
import functools

import jax
import jax.numpy as jnp
from jax.experimental import pallas as pl
from jax.experimental.pallas import tpu as pltpu

# ----------------------------- config ---------------------------------------
B = 2              # batch (graphs / captions)
N = 8              # max nodes per graph
NODE_DIM = 16
EDGE_DIM = 8
HIDDEN = 32        # hidden_dim_graph
NUM_MP_LAYERS = 2
LATENT = 32        # config['latent_size']
TEXT_HIDDEN = 32   # text_config.hidden_size
SEQ = 8            # text sequence length
VOCAB = 64
OUTPUT_DIM = 8     # output_dim
OUT_PAD = 128      # lane-dense padded output width (sliced back outside)

F32 = jnp.float32


def _vmem_specs(n):
    return [pl.BlockSpec(memory_space=pltpu.MemorySpace.VMEM) for _ in range(n)]


# ---------------------- fused forward kernel ---------------------------------
def fused_forward_kernel(*refs):
    # ---- unpack refs (count derived from NUM_MP_LAYERS, no hardcoding) ----
    nodes_ref, adj_ref, edge_ref, mask_ref, cls_ref = refs[:5]
    i = 5
    w_emb, b_emb = refs[i:i + 2]; i += 2
    mp_layers = []
    for _ in range(NUM_MP_LAYERS):
        mp_layers.append(refs[i:i + 4]); i += 4
    w_ro, b_ro = refs[i:i + 2]; i += 2
    w_pool, b_pool = refs[i:i + 2]; i += 2
    tp_w1, tp_b1, tp_w2, tp_b2, tp_w3, tp_b3 = refs[i:i + 6]; i += 6
    cb_w1_txt, cb_w1_mol, cb_b1, cb_w2, cb_b2, cb_w3, cb_b3 = refs[i:i + 7]; i += 7
    out_ref = refs[i]

    # ---------------- GNN mol encoder (batch-vectorized) --------------------
    adj = adj_ref[...]                          # [B, N, N]
    eattr = edge_ref[...]                       # [B, N, N, E]
    mask = mask_ref[...]                        # [B, N, 1]

    # node embedding: one [B*N, NODE_DIM] @ [NODE_DIM, H] MXU push
    x = nodes_ref[...].reshape(B * N, NODE_DIM)
    h = jnp.maximum(
        jnp.dot(x, w_emb[...], preferred_element_type=F32) + b_emb[...], 0.0)

    # message passing: sum aggregation, edge-conditioned messages
    for (w_self, w_nbr, w_edge, b_mp) in mp_layers:
        nbr = jnp.dot(h, w_nbr[...],
                      preferred_element_type=F32).reshape(B, N, HIDDEN)
        # adjacency aggregation as a single-batch-dim batched matmul (MXU)
        agg = jnp.einsum('bnm,bmh->bnh', adj, nbr,
                         preferred_element_type=F32).reshape(B * N, HIDDEN)
        # TODO(synk): einsum('bnm,bnme->bne') would move this onto the MXU, but
        # multi-batch-dim dot_general lowering is not guaranteed; keep the
        # (cheap at this size) VPU multiply + sublane reduce, batched once.
        eagg = jnp.sum(adj[:, :, :, None] * eattr,
                       axis=2).reshape(B * N, EDGE_DIM)
        h = jnp.maximum(
            jnp.dot(h, w_self[...], preferred_element_type=F32)
            + agg
            + jnp.dot(eagg, w_edge[...], preferred_element_type=F32)
            + b_mp[...],
            0.0)                                # [B*N, H]

    # masked sum readout + single readout layer -> latent
    pooled = jnp.sum(h.reshape(B, N, HIDDEN) * mask, axis=1)          # [B, H]
    mol_emb = (jnp.dot(pooled, w_ro[...], preferred_element_type=F32)
               + b_ro[...])                                            # [B, LATENT]

    # ---------------- text branch: pooler + text_proj MLP -------------------
    t = jnp.tanh(jnp.dot(cls_ref[...], w_pool[...],
                         preferred_element_type=F32) + b_pool[...])    # [B, Ht]
    t = jnp.maximum(
        jnp.dot(t, tp_w1[...], preferred_element_type=F32) + tp_b1[...], 0.0)
    t = jnp.maximum(
        jnp.dot(t, tp_w2[...], preferred_element_type=F32) + tp_b2[...], 0.0)
    text_emb = jnp.dot(t, tp_w3[...],
                       preferred_element_type=F32) + tp_b3[...]        # [B, LATENT]

    # ---------------- combine MLP (concat folded into split W1) -------------
    c = jnp.maximum(
        jnp.dot(text_emb, cb_w1_txt[...], preferred_element_type=F32)
        + jnp.dot(mol_emb, cb_w1_mol[...], preferred_element_type=F32)
        + cb_b1[...], 0.0)
    c = jnp.maximum(
        jnp.dot(c, cb_w2[...], preferred_element_type=F32) + cb_b2[...], 0.0)
    # single lane-dense [B, OUT_PAD] store
    out_ref[...] = (jnp.dot(c, cb_w3[...], preferred_element_type=F32)
                    + cb_b3[...])


# ---------------------- parameter init (deterministic) ----------------------
def init_params(key):
    def dense(key, din, dout, scale=0.1):
        kw, kb = jax.random.split(key)
        w = jax.random.normal(kw, (din, dout), F32) * scale
        b = jax.random.normal(kb, (1, dout), F32) * scale
        return w, b

    n_keys = 10 + 3 * NUM_MP_LAYERS
    keys = jax.random.split(key, n_keys)
    ki = iter(range(n_keys))
    p = {}
    # GNN encoder
    p["w_emb"], p["b_emb"] = dense(keys[next(ki)], NODE_DIM, HIDDEN)
    p["mp_layers"] = []
    for _ in range(NUM_MP_LAYERS):
        w_self, b_mp = dense(keys[next(ki)], HIDDEN, HIDDEN)
        w_nbr, _ = dense(keys[next(ki)], HIDDEN, HIDDEN)
        w_edge, _ = dense(keys[next(ki)], EDGE_DIM, HIDDEN)
        p["mp_layers"].append(
            {"w_self": w_self, "w_nbr": w_nbr, "w_edge": w_edge, "b": b_mp})
    p["w_ro"], p["b_ro"] = dense(keys[next(ki)], HIDDEN, LATENT)
    # text: embedding table + pooler
    p["tok_emb"] = jax.random.normal(keys[next(ki)], (VOCAB, TEXT_HIDDEN), F32) * 0.1
    p["w_pool"], p["b_pool"] = dense(keys[next(ki)], TEXT_HIDDEN, TEXT_HIDDEN)
    # text_proj MLP: TEXT_HIDDEN -> LATENT -> LATENT -> LATENT
    p["tp_w1"], p["tp_b1"] = dense(keys[next(ki)], TEXT_HIDDEN, LATENT)
    p["tp_w2"], p["tp_b2"] = dense(keys[next(ki)], LATENT, LATENT)
    p["tp_w3"], p["tp_b3"] = dense(keys[next(ki)], LATENT, LATENT)
    # combine MLP: 2*LATENT -> LATENT -> LATENT -> OUTPUT_DIM
    p["cb_w1"], p["cb_b1"] = dense(keys[next(ki)], 2 * LATENT, LATENT)
    p["cb_w2"], p["cb_b2"] = dense(keys[next(ki)], LATENT, LATENT)
    p["cb_w3"], p["cb_b3"] = dense(keys[next(ki)], LATENT, OUTPUT_DIM)
    return p


def _flatten_weights(p):
    """Kernel-ready flat weight list: concat split into halves, output padded."""
    flat = [p["w_emb"], p["b_emb"]]
    for lyr in p["mp_layers"]:
        flat += [lyr["w_self"], lyr["w_nbr"], lyr["w_edge"], lyr["b"]]
    flat += [p["w_ro"], p["b_ro"], p["w_pool"], p["b_pool"],
             p["tp_w1"], p["tp_b1"], p["tp_w2"], p["tp_b2"],
             p["tp_w3"], p["tp_b3"]]
    # split combine W1 so the kernel avoids materializing the concat
    cb_w1_txt = p["cb_w1"][:LATENT, :]
    cb_w1_mol = p["cb_w1"][LATENT:, :]
    # pad final layer to 128 lanes -> unmasked (dense) output store
    cb_w3_pad = jnp.pad(p["cb_w3"], ((0, 0), (0, OUT_PAD - OUTPUT_DIM)))
    cb_b3_pad = jnp.pad(p["cb_b3"], ((0, 0), (0, OUT_PAD - OUTPUT_DIM)))
    flat += [cb_w1_txt, cb_w1_mol, p["cb_b1"], p["cb_w2"], p["cb_b2"],
             cb_w3_pad, cb_b3_pad]
    return flat


# ---------------------- full forward (GNNCaptionModel.forward) --------------
@functools.partial(jax.jit, static_argnames=())
def gnn_caption_forward(nodes, adj, edge_attr, node_mask, token_ids, params):
    # text glue: gather only the [CLS] token's embedding (1/SEQ of the rows)
    cls_hidden = jnp.take(params["tok_emb"], token_ids[:, 0], axis=0)  # [B, Ht]

    ins = [nodes, adj, edge_attr, node_mask, cls_hidden] + _flatten_weights(params)
    out_pad = pl.pallas_call(
        fused_forward_kernel,
        out_shape=jax.ShapeDtypeStruct((B, OUT_PAD), F32),
        in_specs=_vmem_specs(len(ins)),
        out_specs=pl.BlockSpec(memory_space=pltpu.MemorySpace.VMEM),
    )(*ins)
    return out_pad[:, :OUTPUT_DIM]


# ----------------------------- main ------------------------------------------
if __name__ == "__main__":
    key = jax.random.PRNGKey(0)
    k_param, k_nodes, k_adj, k_edge, k_tok = jax.random.split(key, 5)

    params = init_params(k_param)

    # dense-batched synthetic molecular graphs
    nodes = jax.random.normal(k_nodes, (B, N, NODE_DIM), F32)
    adj_raw = (jax.random.uniform(k_adj, (B, N, N)) > 0.5).astype(F32)
    adj_sym = jnp.minimum(adj_raw + jnp.swapaxes(adj_raw, 1, 2), 1.0)
    # node mask: graph 0 uses all 8 nodes, graph 1 uses 6
    valid = jnp.array([[1.0] * 8, [1.0] * 6 + [0.0] * 2], F32)            # [B, N]
    node_mask = valid[:, :, None]                                          # [B, N, 1]
    adj = adj_sym * valid[:, :, None] * valid[:, None, :]                  # mask padded nodes
    edge_attr = jax.random.normal(k_edge, (B, N, N, EDGE_DIM), F32) * adj[..., None]

    # synthetic caption token ids
    token_ids = jax.random.randint(k_tok, (B, SEQ), 0, VOCAB, dtype=jnp.int32)

    pred = gnn_caption_forward(nodes, adj, edge_attr, node_mask, token_ids, params)
    pred = jax.block_until_ready(pred)
    assert pred.shape == (B, OUTPUT_DIM) and pred.dtype == jnp.float32
    print("KERNEL_OK")
</pallas_src>

<mosaic_0001>
module attributes {stable_mosaic.version = 11 : i64} {
  func.func @fused_forward_kernel(%arg0: memref<2x8x16xf32, #tpu.memory_space<vmem>>, %arg1: memref<2x8x8xf32, #tpu.memory_space<vmem>>, %arg2: memref<2x8x8x8xf32, #tpu.memory_space<vmem>>, %arg3: memref<2x8x1xf32, #tpu.memory_space<vmem>>, %arg4: memref<2x32xf32, #tpu.memory_space<vmem>>, %arg5: memref<16x32xf32, #tpu.memory_space<vmem>>, %arg6: memref<1x32xf32, #tpu.memory_space<vmem>>, %arg7: memref<32x32xf32, #tpu.memory_space<vmem>>, %arg8: memref<32x32xf32, #tpu.memory_space<vmem>>, %arg9: memref<8x32xf32, #tpu.memory_space<vmem>>, %arg10: memref<1x32xf32, #tpu.memory_space<vmem>>, %arg11: memref<32x32xf32, #tpu.memory_space<vmem>>, %arg12: memref<32x32xf32, #tpu.memory_space<vmem>>, %arg13: memref<8x32xf32, #tpu.memory_space<vmem>>, %arg14: memref<1x32xf32, #tpu.memory_space<vmem>>, %arg15: memref<32x32xf32, #tpu.memory_space<vmem>>, %arg16: memref<1x32xf32, #tpu.memory_space<vmem>>, %arg17: memref<32x32xf32, #tpu.memory_space<vmem>>, %arg18: memref<1x32xf32, #tpu.memory_space<vmem>>, %arg19: memref<32x32xf32, #tpu.memory_space<vmem>>, %arg20: memref<1x32xf32, #tpu.memory_space<vmem>>, %arg21: memref<32x32xf32, #tpu.memory_space<vmem>>, %arg22: memref<1x32xf32, #tpu.memory_space<vmem>>, %arg23: memref<32x32xf32, #tpu.memory_space<vmem>>, %arg24: memref<1x32xf32, #tpu.memory_space<vmem>>, %arg25: memref<32x32xf32, #tpu.memory_space<vmem>>, %arg26: memref<32x32xf32, #tpu.memory_space<vmem>>, %arg27: memref<1x32xf32, #tpu.memory_space<vmem>>, %arg28: memref<32x32xf32, #tpu.memory_space<vmem>>, %arg29: memref<1x32xf32, #tpu.memory_space<vmem>>, %arg30: memref<32x128xf32, #tpu.memory_space<vmem>>, %arg31: memref<1x128xf32, #tpu.memory_space<vmem>>, %arg32: memref<2x128xf32, #tpu.memory_space<vmem>>) attributes {dimension_semantics = [], scalar_prefetch = 0 : i64, scratch_operands = 0 : i64, tpu.core_type = #tpu.core_type<tc>} {
    %c0 = arith.constant 0 : index
    %c0_0 = arith.constant 0 : index
    %c0_1 = arith.constant 0 : index
    %0 = vector.load %arg1[%c0, %c0_0, %c0_1] : memref<2x8x8xf32, #tpu.memory_space<vmem>>, vector<2x8x8xf32>
    %c0_2 = arith.constant 0 : index
    %c0_3 = arith.constant 0 : index
    %c0_4 = arith.constant 0 : index
    %c0_5 = arith.constant 0 : index
    %1 = vector.load %arg2[%c0_2, %c0_3, %c0_4, %c0_5] : memref<2x8x8x8xf32, #tpu.memory_space<vmem>>, vector<2x8x8x8xf32>
    %c0_6 = arith.constant 0 : index
    %c0_7 = arith.constant 0 : index
    %c0_8 = arith.constant 0 : index
    %2 = vector.load %arg3[%c0_6, %c0_7, %c0_8] : memref<2x8x1xf32, #tpu.memory_space<vmem>>, vector<2x8x1xf32>
    %c0_9 = arith.constant 0 : index
    %c0_10 = arith.constant 0 : index
    %c0_11 = arith.constant 0 : index
    %3 = vector.load %arg0[%c0_9, %c0_10, %c0_11] : memref<2x8x16xf32, #tpu.memory_space<vmem>>, vector<2x8x16xf32>
    %4 = vector.shape_cast %3 : vector<2x8x16xf32> to vector<16x16xf32>
    %c0_12 = arith.constant 0 : index
    %c0_13 = arith.constant 0 : index
    %5 = vector.load %arg5[%c0_12, %c0_13] : memref<16x32xf32, #tpu.memory_space<vmem>>, vector<16x32xf32>
    %cst = arith.constant dense<0.000000e+00> : vector<16x32xf32>
    %6 = tpu.matmul %4, %5, %cst {dimension_numbers = #tpu.dot_dimension_numbers<[1], [0], [0], [1], [0, 0, 1, 1], [], []>} : vector<16x16xf32>, vector<16x32xf32>, vector<16x32xf32> -> vector<16x32xf32>
    %c0_14 = arith.constant 0 : index
    %c0_15 = arith.constant 0 : index
    %7 = vector.load %arg6[%c0_14, %c0_15] : memref<1x32xf32, #tpu.memory_space<vmem>>, vector<1x32xf32>
    %8 = vector.broadcast %7 : vector<1x32xf32> to vector<16x32xf32>
    %9 = arith.addf %6, %8 : vector<16x32xf32>
    %cst_16 = arith.constant 0.000000e+00 : f32
    %10 = vector.broadcast %cst_16 : f32 to vector<16x32xf32>
    %11 = arith.maximumf %9, %10 : vector<16x32xf32>
    %c0_17 = arith.constant 0 : index
    %c0_18 = arith.constant 0 : index
    %12 = vector.load %arg8[%c0_17, %c0_18] : memref<32x32xf32, #tpu.memory_space<vmem>>, vector<32x32xf32>
    %cst_19 = arith.constant dense<0.000000e+00> : vector<16x32xf32>
    %13 = tpu.matmul %11, %12, %cst_19 {dimension_numbers = #tpu.dot_dimension_numbers<[1], [0], [0], [1], [0, 0, 1, 1], [], []>} : vector<16x32xf32>, vector<32x32xf32>, vector<16x32xf32> -> vector<16x32xf32>
    %14 = vector.shape_cast %13 : vector<16x32xf32> to vector<2x8x32xf32>
    "tpu.trace_start"() <{level = 10 : i32, message = "bnm,bmh->bnh"}> : () -> ()
    %cst_20 = arith.constant dense<0.000000e+00> : vector<2x8x32xf32>
    %15 = tpu.matmul %0, %14, %cst_20 {dimension_numbers = #tpu.dot_dimension_numbers<[2], [1], [1], [2], [0, 0, 0, 1, 1, 2], [0], [0]>} : vector<2x8x8xf32>, vector<2x8x32xf32>, vector<2x8x32xf32> -> vector<2x8x32xf32>
    "tpu.trace_stop"() : () -> ()
    %16 = vector.shape_cast %15 : vector<2x8x32xf32> to vector<16x32xf32>
    %17 = vector.shape_cast %0 : vector<2x8x8xf32> to vector<2x8x8x1xf32>
    %18 = vector.broadcast %17 : vector<2x8x8x1xf32> to vector<2x8x8x8xf32>
    %19 = arith.mulf %18, %1 : vector<2x8x8x8xf32>
    %cst_21 = arith.constant dense<0.000000e+00> : vector<2x8x8xf32>
    %20 = vector.multi_reduction <add>, %19, %cst_21 [2] : vector<2x8x8x8xf32> to vector<2x8x8xf32>
    %21 = vector.shape_cast %20 : vector<2x8x8xf32> to vector<16x8xf32>
    %c0_22 = arith.constant 0 : index
    %c0_23 = arith.constant 0 : index
    %22 = vector.load %arg7[%c0_22, %c0_23] : memref<32x32xf32, #tpu.memory_space<vmem>>, vector<32x32xf32>
    %cst_24 = arith.constant dense<0.000000e+00> : vector<16x32xf32>
    %23 = tpu.matmul %11, %22, %cst_24 {dimension_numbers = #tpu.dot_dimension_numbers<[1], [0], [0], [1], [0, 0, 1, 1], [], []>} : vector<16x32xf32>, vector<32x32xf32>, vector<16x32xf32> -> vector<16x32xf32>
    %24 = arith.addf %23, %16 : vector<16x32xf32>
    %c0_25 = arith.constant 0 : index
    %c0_26 = arith.constant 0 : index
    %25 = vector.load %arg9[%c0_25, %c0_26] : memref<8x32xf32, #tpu.memory_space<vmem>>, vector<8x32xf32>
    %cst_27 = arith.constant dense<0.000000e+00> : vector<16x32xf32>
    %26 = tpu.matmul %21, %25, %cst_27 {dimension_numbers = #tpu.dot_dimension_numbers<[1], [0], [0], [1], [0, 0, 1, 1], [], []>} : vector<16x8xf32>, vector<8x32xf32>, vector<16x32xf32> -> vector<16x32xf32>
    %27 = arith.addf %24, %26 : vector<16x32xf32>
    %c0_28 = arith.constant 0 : index
    %c0_29 = arith.constant 0 : index
    %28 = vector.load %arg10[%c0_28, %c0_29] : memref<1x32xf32, #tpu.memory_space<vmem>>, vector<1x32xf32>
    %29 = vector.broadcast %28 : vector<1x32xf32> to vector<16x32xf32>
    %30 = arith.addf %27, %29 : vector<16x32xf32>
    %cst_30 = arith.constant 0.000000e+00 : f32
    %31 = vector.broadcast %cst_30 : f32 to vector<16x32xf32>
    %32 = arith.maximumf %30, %31 : vector<16x32xf32>
    %c0_31 = arith.constant 0 : index
    %c0_32 = arith.constant 0 : index
    %33 = vector.load %arg12[%c0_31, %c0_32] : memref<32x32xf32, #tpu.memory_space<vmem>>, vector<32x32xf32>
    %cst_33 = arith.constant dense<0.000000e+00> : vector<16x32xf32>
    %34 = tpu.matmul %32, %33, %cst_33 {dimension_numbers = #tpu.dot_dimension_numbers<[1], [0], [0], [1], [0, 0, 1, 1], [], []>} : vector<16x32xf32>, vector<32x32xf32>, vector<16x32xf32> -> vector<16x32xf32>
    %35 = vector.shape_cast %34 : vector<16x32xf32> to vector<2x8x32xf32>
    "tpu.trace_start"() <{level = 10 : i32, message = "bnm,bmh->bnh"}> : () -> ()
    %cst_34 = arith.constant dense<0.000000e+00> : vector<2x8x32xf32>
    %36 = tpu.matmul %0, %35, %cst_34 {dimension_numbers = #tpu.dot_dimension_numbers<[2], [1], [1], [2], [0, 0, 0, 1, 1, 2], [0], [0]>} : vector<2x8x8xf32>, vector<2x8x32xf32>, vector<2x8x32xf32> -> vector<2x8x32xf32>
    "tpu.trace_stop"() : () -> ()
    %37 = vector.shape_cast %36 : vector<2x8x32xf32> to vector<16x32xf32>
    %38 = vector.shape_cast %0 : vector<2x8x8xf32> to vector<2x8x8x1xf32>
    %39 = vector.broadcast %38 : vector<2x8x8x1xf32> to vector<2x8x8x8xf32>
    %40 = arith.mulf %39, %1 : vector<2x8x8x8xf32>
    %cst_35 = arith.constant dense<0.000000e+00> : vector<2x8x8xf32>
    %41 = vector.multi_reduction <add>, %40, %cst_35 [2] : vector<2x8x8x8xf32> to vector<2x8x8xf32>
    %42 = vector.shape_cast %41 : vector<2x8x8xf32> to vector<16x8xf32>
    %c0_36 = arith.constant 0 : index
    %c0_37 = arith.constant 0 : index
    %43 = vector.load %arg11[%c0_36, %c0_37] : memref<32x32xf32, #tpu.memory_space<vmem>>, vector<32x32xf32>
    %cst_38 = arith.constant dense<0.000000e+00> : vector<16x32xf32>
    %44 = tpu.matmul %32, %43, %cst_38 {dimension_numbers = #tpu.dot_dimension_numbers<[1], [0], [0], [1], [0, 0, 1, 1], [], []>} : vector<16x32xf32>, vector<32x32xf32>, vector<16x32xf32> -> vector<16x32xf32>
    %45 = arith.addf %44, %37 : vector<16x32xf32>
    %c0_39 = arith.constant 0 : index
    %c0_40 = arith.constant 0 : index
    %46 = vector.load %arg13[%c0_39, %c0_40] : memref<8x32xf32, #tpu.memory_space<vmem>>, vector<8x32xf32>
    %cst_41 = arith.constant dense<0.000000e+00> : vector<16x32xf32>
    %47 = tpu.matmul %42, %46, %cst_41 {dimension_numbers = #tpu.dot_dimension_numbers<[1], [0], [0], [1], [0, 0, 1, 1], [], []>} : vector<16x8xf32>, vector<8x32xf32>, vector<16x32xf32> -> vector<16x32xf32>
    %48 = arith.addf %45, %47 : vector<16x32xf32>
    %c0_42 = arith.constant 0 : index
    %c0_43 = arith.constant 0 : index
    %49 = vector.load %arg14[%c0_42, %c0_43] : memref<1x32xf32, #tpu.memory_space<vmem>>, vector<1x32xf32>
    %50 = vector.broadcast %49 : vector<1x32xf32> to vector<16x32xf32>
    %51 = arith.addf %48, %50 : vector<16x32xf32>
    %cst_44 = arith.constant 0.000000e+00 : f32
    %52 = vector.broadcast %cst_44 : f32 to vector<16x32xf32>
    %53 = arith.maximumf %51, %52 : vector<16x32xf32>
    %54 = vector.shape_cast %53 : vector<16x32xf32> to vector<2x8x32xf32>
    %55 = vector.broadcast %2 : vector<2x8x1xf32> to vector<2x8x32xf32>
    %56 = arith.mulf %54, %55 : vector<2x8x32xf32>
    %cst_45 = arith.constant dense<0.000000e+00> : vector<2x32xf32>
    %57 = vector.multi_reduction <add>, %56, %cst_45 [1] : vector<2x8x32xf32> to vector<2x32xf32>
    %c0_46 = arith.constant 0 : index
    %c0_47 = arith.constant 0 : index
    %58 = vector.load %arg15[%c0_46, %c0_47] : memref<32x32xf32, #tpu.memory_space<vmem>>, vector<32x32xf32>
    %cst_48 = arith.constant dense<0.000000e+00> : vector<2x32xf32>
    %59 = tpu.matmul %57, %58, %cst_48 {dimension_numbers = #tpu.dot_dimension_numbers<[1], [0], [0], [1], [0, 0, 1, 1], [], []>} : vector<2x32xf32>, vector<32x32xf32>, vector<2x32xf32> -> vector<2x32xf32>
    %c0_49 = arith.constant 0 : index
    %c0_50 = arith.constant 0 : index
    %60 = vector.load %arg16[%c0_49, %c0_50] : memref<1x32xf32, #tpu.memory_space<vmem>>, vector<1x32xf32>
    %61 = vector.broadcast %60 : vector<1x32xf32> to vector<2x32xf32>
    %62 = arith.addf %59, %61 : vector<2x32xf32>
    %c0_51 = arith.constant 0 : index
    %c0_52 = arith.constant 0 : index
    %63 = vector.load %arg4[%c0_51, %c0_52] : memref<2x32xf32, #tpu.memory_space<vmem>>, vector<2x32xf32>
    %c0_53 = arith.constant 0 : index
    %c0_54 = arith.constant 0 : index
    %64 = vector.load %arg17[%c0_53, %c0_54] : memref<32x32xf32, #tpu.memory_space<vmem>>, vector<32x32xf32>
    %cst_55 = arith.constant dense<0.000000e+00> : vector<2x32xf32>
    %65 = tpu.matmul %63, %64, %cst_55 {dimension_numbers = #tpu.dot_dimension_numbers<[1], [0], [0], [1], [0, 0, 1, 1], [], []>} : vector<2x32xf32>, vector<32x32xf32>, vector<2x32xf32> -> vector<2x32xf32>
    %c0_56 = arith.constant 0 : index
    %c0_57 = arith.constant 0 : index
    %66 = vector.load %arg18[%c0_56, %c0_57] : memref<1x32xf32, #tpu.memory_space<vmem>>, vector<1x32xf32>
    %67 = vector.broadcast %66 : vector<1x32xf32> to vector<2x32xf32>
    %68 = arith.addf %65, %67 : vector<2x32xf32>
    %69 = math.tanh %68 : vector<2x32xf32>
    %c0_58 = arith.constant 0 : index
    %c0_59 = arith.constant 0 : index
    %70 = vector.load %arg19[%c0_58, %c0_59] : memref<32x32xf32, #tpu.memory_space<vmem>>, vector<32x32xf32>
    %cst_60 = arith.constant dense<0.000000e+00> : vector<2x32xf32>
    %71 = tpu.matmul %69, %70, %cst_60 {dimension_numbers = #tpu.dot_dimension_numbers<[1], [0], [0], [1], [0, 0, 1, 1], [], []>} : vector<2x32xf32>, vector<32x32xf32>, vector<2x32xf32> -> vector<2x32xf32>
    %c0_61 = arith.constant 0 : index
    %c0_62 = arith.constant 0 : index
    %72 = vector.load %arg20[%c0_61, %c0_62] : memref<1x32xf32, #tpu.memory_space<vmem>>, vector<1x32xf32>
    %73 = vector.broadcast %72 : vector<1x32xf32> to vector<2x32xf32>
    %74 = arith.addf %71, %73 : vector<2x32xf32>
    %cst_63 = arith.constant 0.000000e+00 : f32
    %75 = vector.broadcast %cst_63 : f32 to vector<2x32xf32>
    %76 = arith.maximumf %74, %75 : vector<2x32xf32>
    %c0_64 = arith.constant 0 : index
    %c0_65 = arith.constant 0 : index
    %77 = vector.load %arg21[%c0_64, %c0_65] : memref<32x32xf32, #tpu.memory_space<vmem>>, vector<32x32xf32>
    %cst_66 = arith.constant dense<0.000000e+00> : vector<2x32xf32>
    %78 = tpu.matmul %76, %77, %cst_66 {dimension_numbers = #tpu.dot_dimension_numbers<[1], [0], [0], [1], [0, 0, 1, 1], [], []>} : vector<2x32xf32>, vector<32x32xf32>, vector<2x32xf32> -> vector<2x32xf32>
    %c0_67 = arith.constant 0 : index
    %c0_68 = arith.constant 0 : index
    %79 = vector.load %arg22[%c0_67, %c0_68] : memref<1x32xf32, #tpu.memory_space<vmem>>, vector<1x32xf32>
    %80 = vector.broadcast %79 : vector<1x32xf32> to vector<2x32xf32>
    %81 = arith.addf %78, %80 : vector<2x32xf32>
    %cst_69 = arith.constant 0.000000e+00 : f32
    %82 = vector.broadcast %cst_69 : f32 to vector<2x32xf32>
    %83 = arith.maximumf %81, %82 : vector<2x32xf32>
    %c0_70 = arith.constant 0 : index
    %c0_71 = arith.constant 0 : index
    %84 = vector.load %arg23[%c0_70, %c0_71] : memref<32x32xf32, #tpu.memory_space<vmem>>, vector<32x32xf32>
    %cst_72 = arith.constant dense<0.000000e+00> : vector<2x32xf32>
    %85 = tpu.matmul %83, %84, %cst_72 {dimension_numbers = #tpu.dot_dimension_numbers<[1], [0], [0], [1], [0, 0, 1, 1], [], []>} : vector<2x32xf32>, vector<32x32xf32>, vector<2x32xf32> -> vector<2x32xf32>
    %c0_73 = arith.constant 0 : index
    %c0_74 = arith.constant 0 : index
    %86 = vector.load %arg24[%c0_73, %c0_74] : memref<1x32xf32, #tpu.memory_space<vmem>>, vector<1x32xf32>
    %87 = vector.broadcast %86 : vector<1x32xf32> to vector<2x32xf32>
    %88 = arith.addf %85, %87 : vector<2x32xf32>
    %c0_75 = arith.constant 0 : index
    %c0_76 = arith.constant 0 : index
    %89 = vector.load %arg25[%c0_75, %c0_76] : memref<32x32xf32, #tpu.memory_space<vmem>>, vector<32x32xf32>
    %cst_77 = arith.constant dense<0.000000e+00> : vector<2x32xf32>
    %90 = tpu.matmul %88, %89, %cst_77 {dimension_numbers = #tpu.dot_dimension_numbers<[1], [0], [0], [1], [0, 0, 1, 1], [], []>} : vector<2x32xf32>, vector<32x32xf32>, vector<2x32xf32> -> vector<2x32xf32>
    %c0_78 = arith.constant 0 : index
    %c0_79 = arith.constant 0 : index
    %91 = vector.load %arg26[%c0_78, %c0_79] : memref<32x32xf32, #tpu.memory_space<vmem>>, vector<32x32xf32>
    %cst_80 = arith.constant dense<0.000000e+00> : vector<2x32xf32>
    %92 = tpu.matmul %62, %91, %cst_80 {dimension_numbers = #tpu.dot_dimension_numbers<[1], [0], [0], [1], [0, 0, 1, 1], [], []>} : vector<2x32xf32>, vector<32x32xf32>, vector<2x32xf32> -> vector<2x32xf32>
    %93 = arith.addf %90, %92 : vector<2x32xf32>
    %c0_81 = arith.constant 0 : index
    %c0_82 = arith.constant 0 : index
    %94 = vector.load %arg27[%c0_81, %c0_82] : memref<1x32xf32, #tpu.memory_space<vmem>>, vector<1x32xf32>
    %95 = vector.broadcast %94 : vector<1x32xf32> to vector<2x32xf32>
    %96 = arith.addf %93, %95 : vector<2x32xf32>
    %cst_83 = arith.constant 0.000000e+00 : f32
    %97 = vector.broadcast %cst_83 : f32 to vector<2x32xf32>
    %98 = arith.maximumf %96, %97 : vector<2x32xf32>
    %c0_84 = arith.constant 0 : index
    %c0_85 = arith.constant 0 : index
    %99 = vector.load %arg28[%c0_84, %c0_85] : memref<32x32xf32, #tpu.memory_space<vmem>>, vector<32x32xf32>
    %cst_86 = arith.constant dense<0.000000e+00> : vector<2x32xf32>
    %100 = tpu.matmul %98, %99, %cst_86 {dimension_numbers = #tpu.dot_dimension_numbers<[1], [0], [0], [1], [0, 0, 1, 1], [], []>} : vector<2x32xf32>, vector<32x32xf32>, vector<2x32xf32> -> vector<2x32xf32>
    %c0_87 = arith.constant 0 : index
    %c0_88 = arith.constant 0 : index
    %101 = vector.load %arg29[%c0_87, %c0_88] : memref<1x32xf32, #tpu.memory_space<vmem>>, vector<1x32xf32>
    %102 = vector.broadcast %101 : vector<1x32xf32> to vector<2x32xf32>
    %103 = arith.addf %100, %102 : vector<2x32xf32>
    %cst_89 = arith.constant 0.000000e+00 : f32
    %104 = vector.broadcast %cst_89 : f32 to vector<2x32xf32>
    %105 = arith.maximumf %103, %104 : vector<2x32xf32>
    %c0_90 = arith.constant 0 : index
    %c0_91 = arith.constant 0 : index
    %106 = vector.load %arg30[%c0_90, %c0_91] : memref<32x128xf32, #tpu.memory_space<vmem>>, vector<32x128xf32>
    %cst_92 = arith.constant dense<0.000000e+00> : vector<2x128xf32>
    %107 = tpu.matmul %105, %106, %cst_92 {dimension_numbers = #tpu.dot_dimension_numbers<[1], [0], [0], [1], [0, 0, 1, 1], [], []>} : vector<2x32xf32>, vector<32x128xf32>, vector<2x128xf32> -> vector<2x128xf32>
    %c0_93 = arith.constant 0 : index
    %c0_94 = arith.constant 0 : index
    %108 = vector.load %arg31[%c0_93, %c0_94] : memref<1x128xf32, #tpu.memory_space<vmem>>, vector<1x128xf32>
    %109 = vector.broadcast %108 : vector<1x128xf32> to vector<2x128xf32>
    %110 = arith.addf %107, %109 : vector<2x128xf32>
    %c0_95 = arith.constant 0 : index
    %c0_96 = arith.constant 0 : index
    %111 = vector.load %arg32[%c0_95, %c0_96] : memref<2x128xf32, #tpu.memory_space<vmem>>, vector<2x128xf32>
    tpu.vector_store %arg32[%c0_95, %c0_96], %110 {strides = array<i32>} : memref<2x128xf32, #tpu.memory_space<vmem>>, vector<2x128xf32>,
    return
  }
}

</mosaic_0001>

<bundles_post_ra>
// kernel: gnn_caption_forward.1
= control target key start
LH: loop header
LB: loop body
LE: loop exit
PB: predicated region body
PF: predicated region fallthrough
CT: control target
= control target key end

     0   :  { %s2699_s6 = smov 1   ;;  %s2700_s10 = smov 2   ;;  %s3156_s0 = inlined_call_operand.smem [shape: u32[33], index: -1, kind: input, shape index: {}] }
   0x1   :  { %s2750_s5 = sld [smem:[%s3156_s0]]   ;;  %s2701_s14 = smov 3  }
   0x2   :  { %s2755_s9 = sld [smem:[%s3156_s0 + %s2699_s6]]   ;;  %s2702_s18 = smov 4  }
   0x3   :  { %s2760_s13 = sld [smem:[%s3156_s0 + %s2700_s10]]   ;;  %s2703_s22 = smov 5  }
   0x4   :  { %s2765_s17 = sld [smem:[%s3156_s0 + %s2701_s14]]   ;;  %s2704_s26 = smov 6  }
   0x5   :  { %s2770_s21 = sld [smem:[%s3156_s0 + %s2702_s18]]   ;;  %s2705_s30 = smov 7  }
   0x6   :  { %s2775_s25 = sld [smem:[%s3156_s0 + %s2703_s22]]   ;;  %s2706_s4 = smov 8  }
   0x7   :  { %s2780_s29 = sld [smem:[%s3156_s0 + %s2704_s26]]   ;;  %s2707_s10 = smov 9  }
   0x8   :  { %s2785_s3 = sld [smem:[%s3156_s0 + %s2705_s30]]   ;;  %s2708_s15 = smov 10  }
   0x9   :  { %s2790_s8 = sld [smem:[%s3156_s0 + %s2706_s4]]   ;;  %s2709_s20 = smov 11  }
   0xa   :  { %3166 = sst [smem:[#allocation16_spill]] %s2765_s17  ;;  %s2710_s26 = smov 12  }
   0xb   :  { %3167 = sst [smem:[#allocation17_spill]] %s2770_s21  ;;  %s2711_s1 = smov 13  }
   0xc   :  { %s2795_s14 = sld [smem:[%s3156_s0 + %s2707_s10]]   ;;  %s2712_s7 = smov 14  }
   0xd   :  { %s2800_s19 = sld [smem:[%s3156_s0 + %s2708_s15]]   ;;  %s2713_s15 = smov 15  }
   0xe   :  { %s2805_s24 = sld [smem:[%s3156_s0 + %s2709_s20]]   ;;  %s2714_s22 = smov 16  }
   0xf   :  { %s2810_s30 = sld [smem:[%s3156_s0 + %s2710_s26]]   ;;  %s2715_s28 = smov 17  }
  0x10   :  { %s2815_s6 = sld [smem:[%s3156_s0 + %s2711_s1]]  }
  0x11   :  { %s2820_s12 = sld [smem:[%s3156_s0 + %s2712_s7]]   ;;  %s2716_s7 = smov 18  }
  0x12   :  { %s2825_s20 = sld [smem:[%s3156_s0 + %s2713_s15]]   ;;  %s2717_s15 = smov 19  }
  0x13   :  { %3168 = sst [smem:[#allocation18_spill]] %s2800_s19 }
  0x14   :  { %s2830_s27 = sld [smem:[%s3156_s0 + %s2714_s22]]   ;;  %s2718_s22 = smov 20  }
  0x15   :  { %s2835_s4 = sld [smem:[%s3156_s0 + %s2715_s28]]   ;;  %s2719_s28 = smov 21  }
  0x16   :  { %s2855_s21 = sld [smem:[%s3156_s0 + %s2719_s28]]   ;;  %s2723_s28 = smov 25  }
  0x17   :  { %3169 = sst [smem:[#allocation19_spill]] %s2820_s12 }
  0x18   :  { %3170 = sst [smem:[#allocation20_spill]] %s2825_s20 }
  0x19   :  { %s2840_s12 = sld [smem:[%s3156_s0 + %s2716_s7]]   ;;  %s2720_s7 = smov 22  }
  0x1a   :  { %3171 = sst [smem:[#allocation21_spill]] %s2830_s27 }
  0x1b   :  { %3172 = sst [smem:[#allocation22_spill]] %s2835_s4 }
  0x1c   :  { %s2845_s20 = sld [smem:[%s3156_s0 + %s2717_s15]]   ;;  %s2721_s15 = smov 23  }
  0x1d   :  { %s2850_s27 = sld [smem:[%s3156_s0 + %s2718_s22]]   ;;  %s2722_s22 = smov 24  }
  0x1e   :  { %3175 = sst [smem:[#allocation25_spill]] %s2855_s21 }
  0x1f   :  { %3173 = sst [smem:[#allocation23_spill]] %s2840_s12 }
  0x20   :  { %s2860_s12 = sld [smem:[%s3156_s0 + %s2720_s7]]   ;;  %s2724_s7 = smov 26  }
  0x21   :  { %s2870_s17 = sld [smem:[%s3156_s0 + %s2722_s22]]   ;;  %s2726_s22 = smov 28  }
  0x22   :  { %3174 = sst [smem:[#allocation24_spill]] %s2845_s20 }
  0x23   :  { %s2865_s20 = sld [smem:[%s3156_s0 + %s2721_s15]]   ;;  %s2725_s15 = smov 27  }
  0x24   :  { %s2875_s21 = sld [smem:[%s3156_s0 + %s2723_s28]]   ;;  %s2727_s28 = smov 29  }
  0x25   :  { %s2880_s4 = sld [smem:[%s3156_s0 + %s2724_s7]]   ;;  %s2728_s7 = smov 30  }
  0x26   :  { %s2890_s19 = sld [smem:[%s3156_s0 + %s2726_s22]]   ;;  %s2730_s22 = smov 32  }
  0x29   :  { %3176 = sst [smem:[#allocation26_spill]] %s2865_s20 }
  0x2a   :  { %3177 = sst [smem:[#allocation27_spill]] %s2875_s21 }
  0x2b   :  { %3178 = sst [smem:[#allocation28_spill]] %s2880_s4 }
  0x2c   :  { %s2885_s20 = sld [smem:[%s3156_s0 + %s2725_s15]]   ;;  %s2729_s15 = smov 31  }
  0x2d   :  { %3180 = sst [smem:[#allocation30_spill]] %s2890_s19 }
  0x2e   :  { %s2895_s21 = sld [smem:[%s3156_s0 + %s2727_s28]]  }
  0x2f   :  { %s2900_s4 = sld [smem:[%s3156_s0 + %s2728_s7]]  }
  0x30   :  { %s2910_s19 = sld [smem:[%s3156_s0 + %s2730_s22]]  }
  0x32   :  { %3179 = sst [smem:[#allocation29_spill]] %s2885_s20 }
  0x33   :  { %s2905_s20 = sld [smem:[%s3156_s0 + %s2729_s15]]  }
  0x34   :  { %70 = vsyncpa [#allocation3], 0 }
  0x35   :  { %71 = vsyncpa [#allocation6], 0 }
  0x36   :  { %72 = vsyncpa [#allocation9], 0 }
  0x37   :  { %73 = vsyncpa [#allocation4], 0  ;;  %s2731_s28 = smov [#allocation5]   ;;  %s2732_s2 = smov [#allocation8]  }
  0x38   :  { %s116_s1 = sshll.u32 %s2731_s28, 4  ;;  %s150_s7 = sshll.u32 %s2732_s2, 4  ;;  %s117_s1 = int_to_ptr.vmem [resolvable:$true] %s116_s1  ;;  %s151_s7 = int_to_ptr.vmem [resolvable:$true] %s150_s7 }
  0x39   :  { %s2579_s10 = scalar_lea.vmem %s117_s1, 128  ;;  %p2584_p1 = scmp.lt.s32.totalorder %s117_s1, %s117_s1 }
  0x3a   :  { %p2580_p0 = scmp.ne.s32.totalorder %s117_s1, %s2579_s10  ;;  %p2585_p2 = scmp.lt.s32.totalorder %s2579_s10, %s2579_s10 }
  0x3c   :  { %p2586_p3 = por %p2585_p2, %p2584_p1 }
  0x3e   :  { %p2587_p4 = pnand %p2586_p3, %p2580_p0 }
  0x40   :  { %2590 = shalt.err (!%p2587_p4)
}
  0x41   :  { %119 = dma.hbm_to_vmem [thread:$0]  %s2815_s6, 128, %s117_s1, [#allocation6]  }
  0x42   :  { %s2599_s0 = scalar_lea.vmem %s151_s7, 16  ;;  %s2603_s11 = scalar_lea.vmem %s151_s7, 32 }
  0x43   :  { %p2600_p5 = scmp.ne.s32.totalorder %s151_s7, %s2599_s0  ;;  %p2604_p6 = scmp.lt.s32.totalorder %s151_s7, %s151_s7 }
  0x44   :  { %p2605_p7 = scmp.lt.s32.totalorder %s2603_s11, %s2599_s0 }
  0x46   :  { %p2606_p8 = por %p2605_p7, %p2604_p6 }
  0x48   :  { %p2607_p9 = pnand %p2606_p8, %p2600_p5 }
  0x4a   :  { %2610 = shalt.err (!%p2607_p9)
}
  0x4b   :  { %153 = dma.hbm_to_vmem [thread:$0]  %s2860_s12, 16, %s151_s7, [#allocation9]  }
  0x4c   :  { %s2733_s15 = smov [#allocation2]  }
  0x4d   :  { %s89_s16 = sshll.u32 %s2733_s15, 4  ;;  %s90_s16 = int_to_ptr.vmem [resolvable:$true] %s89_s16 }
  0x4e   :  { %s2619_s18 = scalar_lea.vmem %s90_s16, 256  ;;  %p2624_p11 = scmp.lt.s32.totalorder %s90_s16, %s90_s16 }
  0x4f   :  { %p2620_p10 = scmp.ne.s32.totalorder %s90_s16, %s2619_s18  ;;  %p2625_p12 = scmp.lt.s32.totalorder %s2619_s18, %s2619_s18 }
  0x51   :  { %p2626_p13 = por %p2625_p12, %p2624_p11 }
  0x53   :  { %p2627_p0 = pnand %p2626_p13, %p2620_p10 }
  0x55   :  { %2630 = shalt.err (!%p2627_p0)
}
  0x56   :  { %s2734_s6 = smov 128   ;;  %s2735_s22 = smov 8  }
  0x57   :  { %95 = dma.hbm_to_vmem [thread:$0]  %s2775_s25, 256, %s90_s16, [#allocation3], %s2734_s6, %s2734_s6, %s2735_s22  }
  0x58   :  { %s2736_s23 = smov [#allocation7]   ;;  %s2737_s28 = smov [#allocation10]  }
  0x59   :  { %s138_s26 = sshll.u32 %s2736_s23, 4  ;;  %s162_s1 = sshll.u32 %s2737_s28, 4  ;;  %s139_s26 = int_to_ptr.vmem [resolvable:$true] %s138_s26  ;;  %s163_s1 = int_to_ptr.vmem [resolvable:$true] %s162_s1 }
  0x5a   :  { %s2639_s12 = scalar_lea.vmem %s139_s26, 16  ;;  %s2643_s2 = scalar_lea.vmem %s139_s26, 32 }
  0x5b   :  { %p2640_p1 = scmp.ne.s32.totalorder %s139_s26, %s2639_s12  ;;  %p2644_p2 = scmp.lt.s32.totalorder %s139_s26, %s139_s26 }
  0x5c   :  { %p2645_p3 = scmp.lt.s32.totalorder %s2643_s2, %s2639_s12 }
  0x5e   :  { %p2646_p4 = por %p2645_p3, %p2644_p2 }
  0x60   :  { %p2647_p5 = pnand %p2646_p4, %p2640_p1 }
  0x62   :  { %2650 = shalt.err (!%p2647_p5)
}
  0x63   :  { %141 = dma.hbm_to_vmem [thread:$0]  %s2850_s27, 16, %s139_s26, [#allocation6]  }
  0x64   :  { %s2659_s7 = scalar_lea.vmem %s163_s1, 16  ;;  %s2663_s10 = scalar_lea.vmem %s163_s1, 32 }
  0x65   :  { %p2660_p6 = scmp.ne.s32.totalorder %s163_s1, %s2659_s7  ;;  %p2664_p7 = scmp.lt.s32.totalorder %s163_s1, %s163_s1 }
  0x66   :  { %p2665_p8 = scmp.lt.s32.totalorder %s2663_s10, %s2659_s7 }
  0x68   :  { %p2666_p9 = por %p2665_p8, %p2664_p7 }
  0x6a   :  { %p2667_p10 = pnand %p2666_p9, %p2660_p6 }
  0x6c   :  { %2670 = shalt.err (!%p2667_p10)
}
  0x6d   :  { %165 = dma.hbm_to_vmem [thread:$0]  %s2870_s17, 16, %s163_s1, [#allocation9]  }
  0x6e   :  { %2691 = dma.done.wait [#allocation3], 256  }
  0x6f   :  { %2692 = vsyncadd [#allocation3], 4294967040 }
  0x70   :  { %2693 = dma.done.wait [#allocation6], 144  }
  0x71   :  { %2694 = vsyncadd [#allocation6], 4294967152 }
  0x72   :  { %2695 = dma.done.wait [#allocation9], 32  }
  0x73   :  { %2696 = vsyncadd [#allocation9], 4294967264  ;;  %vm226_vm0 = vcmask 130048   ;;  %v218_v0 = vld [vmem:[#allocation2 + $0x8] sm:$0xff]  ;;  %v217_v1 = vld [vmem:[#allocation2] sm:$0xff]  ;;  %v543_v9 = vlaneseq  ;;  %vm314_vm1 = vcmask 261120  }
  0x74   :  { %v215_v2 = vld [vmem:[%s2750_s5] sm:$0xff]  ;;  %2344 = vmatprep.subr.mxu0 %v218_v0  ;;  %v313_v3 = vld [vmem:[%s2790_s8 + $0x18] sm:$0xff]  ;;  %v216_v4 = vld [vmem:[%s2750_s5 + $0x8] sm:$0xff]  ;;  %v2738_v47 = vmov 0.0   ;;  %vm2739_vm2 = vmmov 0   ;;  %vm396_vm3 = vcmask 64512  }
  0x75   :  { %2348 = vmatprep.mubr.msk.f32.mxu0 %vm226_vm0, %v215_v2  ;;  %2345 = vmatpush3.msra.mxu0 %v218_v0  ;;  %v312_v5 = vld [vmem:[%s2790_s8 + $0x10] sm:$0xff]  ;;  %v311_v6 = vld [vmem:[%s2790_s8 + $0x8] sm:$0xff]  ;;  %v310_v7 = vld [vmem:[%s2790_s8] sm:$0xff]  ;;  %v544_v10 = vshrl.u32 %v543_v9, 7  ;;  %vm879_vm4 = vcmask 1041409   ;;  %vm881_vm5 = vcmask 1042434  }
  0x76   :  { %2351 = vmatprep.subr.mxu1 %v313_v3  ;;  %2346 = vmatprep.subr.mxu0 %v217_v1  ;;  %v786_v8 = vld [vmem:[%s2785_s3 + $0x18] sm:$0xff]  ;;  %v2925_v11 = vld [vmem:[%s2755_s9] sm:$0xff]  ;;  %v2928_v15 = vld [vmem:[%s2755_s9 + $0x8] sm:$0xff]  ;;  %vm883_vm6 = vcmask 1043459   ;;  %vm885_vm7 = vcmask 1044484   ;;  %vm887_vm8 = vcmask 1045509  }
  0x77   :  { %2352 = vmatpush3.msra.mxu1 %v313_v3  ;;  %2347 = vmatpush3.msra.mxu0 %v217_v1  ;;  %v559_v12 = vsub.s32 2, %v544_v10  ;;  %v545_v13 = vsub.s32 0, %v544_v10  ;;  %v552_v14 = vsub.s32 1, %v544_v10  ;;  %v566_v20 = vsub.s32 3, %v544_v10  ;;  %v2219_v37 = vld [vmem:[%s2780_s29] ss:$0 sm:$0xff] }
  0x78   :  { %2349 = vmatmul.mubr.msk.f32.vlgmr.msra.gmra.mxu0 %vm226_vm0, %v216_v4  ;;  %2353 = vmatprep.subr.mxu1 %v312_v5  ;;  %v573_v23 = vsub.s32 4, %v544_v10  ;;  %v580_v26 = vsub.s32 5, %v544_v10  ;;  %v587_v29 = vsub.s32 6, %v544_v10  ;;  %v594_v32 = vsub.s32 7, %v544_v10  ;;  %v785_v44 = vld [vmem:[%s2785_s3 + $0x10] sm:$0xff]  ;;  %v784_v45 = vld [vmem:[%s2785_s3 + $0x8] sm:$0xff] }
  0x79   :  { %2354 = vmatpush3.msra.mxu1 %v312_v5  ;;  %v560_v16 = vrot.slane %v2925_v11, %v559_v12  ;;  %v546_v17 = vrot.slane %v2925_v11, %v545_v13  ;;  %v602_v18 = vrot.slane %v2928_v15, %v545_v13  ;;  %v553_v19 = vrot.slane %v2925_v11, %v552_v14  ;;  %v783_v46 = vld [vmem:[%s2785_s3] sm:$0xff]  ;;  %v198_v57 = vld [vmem:[%s2760_s13 + $0x8] sm:$0xff]  ;;  %v199_v58 = vld [vmem:[%s2760_s13 + $0x10] sm:$0xff]  ;;  %s3181_s5 = sld [smem:[#allocation18_spill]]  ;;  %s2741_s16 = smov [#allocation11]  }
  0x7a   :  { %2355 = vmatprep.subr.mxu1 %v311_v6  ;;  %v567_v21 = vrot.slane %v2925_v11, %v566_v20  ;;  %v609_v22 = vrot.slane %v2928_v15, %v552_v14  ;;  %v574_v24 = vrot.slane %v2925_v11, %v573_v23  ;;  %v616_v25 = vrot.slane %v2928_v15, %v559_v12  ;;  %v197_v56 = vld [vmem:[%s2760_s13] sm:$0xff]  ;;  %v206_v63 = vld [vmem:[%s2760_s13 + $0x48] sm:$0xff]  ;;  %v200_v3 = vld [vmem:[%s2760_s13 + $0x18] sm:$0xff]  ;;  %s3182_s9 = sld [smem:[#allocation22_spill]]  ;;  %s2176_s18 = sshll.u32 %s2741_s16, 4  ;;  %s2177_s18 = int_to_ptr.vmem [resolvable:$true] %s2176_s18 }
  0x7b   :  { %2356 = vmatpush3.msra.mxu1 %v311_v6  ;;  %562 = vbcast.lane.b32.xlu1 %v560_v16, 256  ;;  %v581_v27 = vrot.slane %v2925_v11, %v580_v26  ;;  %v623_v28 = vrot.slane %v2928_v15, %v566_v20  ;;  %v588_v30 = vrot.slane %v2925_v11, %v587_v29  ;;  %v205_v60 = vld [vmem:[%s2760_s13 + $0x40] sm:$0xff]  ;;  %vm889_vm9 = vcmask 1046534   ;;  %s3184_s17 = sld [smem:[#allocation17_spill]]  ;;  %s2671_s6 = scalar_lea.vmem %s2177_s18, 32 }
  0x7c   :  { %2357 = vmatprep.subr.mxu1 %v310_v7  ;;  %548 = vbcast.lane.b32.xlu0 %v546_v17, 256  ;;  %v630_v31 = vrot.slane %v2928_v15, %v573_v23  ;;  %v595_v33 = vrot.slane %v2925_v11, %v594_v32  ;;  %v637_v34 = vrot.slane %v2928_v15, %v580_v26  ;;  %v201_v17 = vld [vmem:[%s2760_s13 + $0x20] sm:$0xff]  ;;  %v202_v26 = vld [vmem:[%s2760_s13 + $0x28] sm:$0xff]  ;;  %vm891_vm10 = vcmask 1047559   ;;  %s3185_s25 = sld [smem:[#allocation20_spill]]  ;;  %p2672_p11 = scmp.ne.s32.totalorder %s2177_s18, %s2671_s6 }
  0x7d   :  { %2358 = vmatpush3.msra.mxu1 %v310_v7  ;;  %v644_v35 = vrot.slane %v2928_v15, %v587_v29  ;;  %v651_v36 = vrot.slane %v2928_v15, %v594_v32  ;;  %2362 = vmatprep.subr.mxu0 %v2738_v47  ;;  %v207_v7 = vld [vmem:[%s2760_s13 + $0x50] sm:$0xff]  ;;  %s3186_s29 = sld [smem:[#allocation19_spill]]  ;;  %p2676_p12 = scmp.lt.s32.totalorder %s2177_s18, %s2177_s18 }
  0x7e   :  { %2372 = vmatprep.subr.mxu1 %v786_v8  ;;  %2364 = vmatprep.mubr.msk.f32.mxu0 %vm2739_vm2, %v2738_v47  ;;  %s3187_s3 = sld [smem:[#allocation23_spill]]  ;;  %p2677_p13 = scmp.lt.s32.totalorder %s2671_s6, %s2671_s6 }
  0x7f   :  { %604 = vbcast.lane.b32.xlu1 %v602_v18, 256  ;;  %s3188_s8 = sld [smem:[#allocation24_spill]] }
  0x80   :  { %555 = vbcast.lane.b32.xlu0 %v553_v19, 256  ;;  %v208_v19 = vld [vmem:[%s2760_s13 + $0x58] sm:$0xff]  ;;  %s3192_s27 = sld [smem:[#allocation21_spill]]  ;;  %p2678_p0 = por %p2677_p13, %p2676_p12 }
  0x81   :  { %s3193_s0 = sld [smem:[#allocation27_spill]] }
  0x82   :  { %s3194_s11 = sld [smem:[#allocation30_spill]]  ;;  %p2679_p1 = pnand %p2678_p0, %p2672_p11 }
  0x83   :  { %569 = vbcast.lane.b32.xlu1 %v567_v21, 256  ;;  %s3195_s15 = sld [smem:[#allocation29_spill]] }
  0x84   :  { %611 = vbcast.lane.b32.xlu0 %v609_v22, 256 }
  0x87   :  { %576 = vbcast.lane.b32.xlu1 %v574_v24, 256 }
  0x88   :  { %618 = vbcast.lane.b32.xlu0 %v616_v25, 256 }
  0x8b   :  { %583 = vbcast.lane.b32.xlu1 %v581_v27, 256 }
  0x8c   :  { %625 = vbcast.lane.b32.xlu0 %v623_v28, 256  ;;  %v209_v28 = vld [vmem:[%s2760_s13 + $0x60] sm:$0xff] }
  0x8f   :  { %590 = vbcast.lane.b32.xlu1 %v588_v30, 256 }
  0x90   :  { %632 = vbcast.lane.b32.xlu0 %v630_v31, 256 }
  0x93   :  { %597 = vbcast.lane.b32.xlu1 %v595_v33, 256 }
  0x94   :  { %639 = vbcast.lane.b32.xlu0 %v637_v34, 256 }
  0x97   :  { %653 = vbcast.lane.b32.xlu1 %v651_v36, 256 }
  0x98   :  { %646 = vbcast.lane.b32.xlu0 %v644_v35, 256 }
  0xed   :  { %v563_v49 = vpop.permute.xlu1 %562 }
  0xee   :  { %v549_v48 = vpop.permute.xlu0 %548  ;;  %v657_v0 = vmul.f32 %v563_v49, %v199_v58 }
  0xef   :  { %v655_v61 = vmul.f32 %v549_v48, %v197_v56 }
  0xf0   :  { %v685_v9 = vsel %vm396_vm3, %v657_v0, 0.0 }
  0xf1   :  { %v605_v51 = vpop.permute.xlu1 %604  ;;  %v671_v5 = vsel %vm396_vm3, %v655_v61, 0.0  ;;  %v686_v21 = vrot.slane %v685_v9, 4 }
  0xf2   :  { %v556_v50 = vpop.permute.xlu0 %555  ;;  %v663_v2 = vmul.f32 %v605_v51, %v205_v60  ;;  %v672_v13 = vrot.slane %v671_v5, 4  ;;  %v204_v51 = vld [vmem:[%s2760_s13 + $0x38] sm:$0xff] }
  0xf3   :  { %v656_v62 = vmul.f32 %v556_v50, %v198_v57  ;;  %v687_v33 = vadd.f32 %v686_v21, %v685_v9 }
  0xf4   :  { %v727_v12 = vsel %vm396_vm3, %v663_v2, 0.0  ;;  %v673_v30 = vadd.f32 %v672_v13, %v671_v5  ;;  %v212_v2 = vld [vmem:[%s2760_s13 + $0x78] sm:$0xff] }
  0xf5   :  { %v570_v53 = vpop.permute.xlu1 %569  ;;  %v678_v6 = vsel %vm396_vm3, %v656_v62, 0.0  ;;  %v728_v22 = vrot.slane %v727_v12, 4  ;;  %v688_v48 = vrot.slane %v687_v33, 2 }
  0xf6   :  { %v612_v52 = vpop.permute.xlu0 %611  ;;  %v658_v10 = vmul.f32 %v570_v53, %v200_v3  ;;  %v679_v14 = vrot.slane %v678_v6, 4  ;;  %v211_v53 = vld [vmem:[%s2760_s13 + $0x70] sm:$0xff] }
  0xf7   :  { %v664_v4 = vmul.f32 %v612_v52, %v206_v63  ;;  %v729_v35 = vadd.f32 %v728_v22, %v727_v12 }
  0xf8   :  { %v692_v23 = vsel %vm396_vm3, %v658_v10, 0.0  ;;  %v680_v31 = vadd.f32 %v679_v14, %v678_v6 }
  0xf9   :  { %v577_v55 = vpop.permute.xlu1 %576  ;;  %v734_v16 = vsel %vm396_vm3, %v664_v4, 0.0  ;;  %v693_v34 = vrot.slane %v692_v23, 4 }
  0xfa   :  { %v619_v54 = vpop.permute.xlu0 %618  ;;  %v735_v24 = vrot.slane %v734_v16, 4  ;;  %v659_v25 = vmul.f32 %v577_v55, %v201_v17 }
  0xfb   :  { %v665_v18 = vmul.f32 %v619_v54, %v207_v7  ;;  %v694_v49 = vadd.f32 %v693_v34, %v692_v23 }
  0xfd   :  { %v584_v1 = vpop.permute.xlu1 %583  ;;  %v741_v32 = vsel %vm396_vm3, %v665_v18, 0.0  ;;  %v695_v9 = vrot.slane %v694_v49, 2 }
  0xfe   :  { %v626_v59 = vpop.permute.xlu0 %625  ;;  %v660_v36 = vmul.f32 %v584_v1, %v202_v26 }
  0xff   :  { %v666_v27 = vmul.f32 %v626_v59, %v208_v19  ;;  %v730_v59 = vrot.slane %v729_v35, 2 }
 0x100   :  { %v706_v56 = vsel %vm396_vm3, %v660_v36, 0.0 }
 0x101   :  { %v591_v20 = vpop.permute.xlu1 %590  ;;  %v707_v4 = vrot.slane %v706_v56, 4  ;;  %v731_v13 = vadd.f32 %v730_v59, %v729_v35 }
 0x103   :  { %v732_v34 = vrot.slane %v731_v13, 1 }
 0x138   :  { %v2350_v38 = vpop.f32.mrf.mxu0 }
 0x139   :  { %v305_v39 = vadd.f32 %v2350_v38, %v2219_v37 }
 0x13a   :  { %v299_v40 = vpop.f32.mrf.mxu0 }
 0x13b   :  { %v300_v41 = vadd.f32 %v2219_v37, %v299_v40  ;;  %v309_v43 = vmax.f32 %v305_v39, 0.0  ;;  %v203_v37 = vld [vmem:[%s2760_s13 + $0x30] sm:$0xff]  ;;  %v598_v39 = vpop.permute.xlu1 %597  ;;  %v210_v40 = vld [vmem:[%s2760_s13 + $0x68] sm:$0xff]  ;;  %s3183_s13 = sld [smem:[#allocation16_spill]] }
 0x13c   :  { %v661_v50 = vmul.f32 %v591_v20, %v203_v37  ;;  %v662_v0 = vmul.f32 %v598_v39, %v204_v51  ;;  %v733_v51 = vadd.f32 %v732_v34, %v731_v13 }
 0x13d   :  { %v308_v42 = vmax.f32 %v300_v41, 0.0  ;;  %v736_v41 = vadd.f32 %v735_v24, %v734_v16  ;;  %v708_v24 = vadd.f32 %v707_v4, %v706_v56 }
 0x13e   :  { %v713_v5 = vsel %vm396_vm3, %v661_v50, 0.0  ;;  %v720_v19 = vsel %vm396_vm3, %v662_v0, 0.0 }
 0x13f   :  { %2359 = vmatprep.mubr.msk.f32.mxu1 %vm314_vm1, %v308_v42  ;;  %v737_v60 = vrot.slane %v736_v41, 2  ;;  %v654_v3 = vpop.permute.xlu1 %653  ;;  %v714_v18 = vrot.slane %v713_v5, 4 }
 0x140   :  { %2360 = vmatmul.mubr.msk.f32.vlgmr.msra.gmra.mxu1 %vm314_vm1, %v309_v43  ;;  %v670_v17 = vmul.f32 %v654_v3, %v212_v2 }
 0x141   :  { %2373 = vmatpush3.msra.mxu1 %v786_v8  ;;  %2380 = vmatprep.mubr.msk.f32.mxu1 %vm314_vm1, %v308_v42  ;;  %v633_v8 = vpop.permute.xlu0 %632  ;;  %v699_v42 = vsel %vm396_vm3, %v659_v25, 0.0  ;;  %v738_v14 = vadd.f32 %v737_v60, %v736_v41  ;;  %v715_v36 = vadd.f32 %v714_v18, %v713_v5 }
 0x142   :  { %2374 = vmatprep.subr.mxu1 %v785_v44  ;;  %v667_v38 = vmul.f32 %v633_v8, %v209_v28  ;;  %v700_v55 = vrot.slane %v699_v42, 4  ;;  %v689_v8 = vadd.f32 %v688_v48, %v687_v33  ;;  %v776_v33 = vsel %vm396_vm3, %v670_v17, 0.0 }
 0x143   :  { %2375 = vmatpush3.msra.mxu1 %v785_v44  ;;  %v748_v44 = vsel %vm396_vm3, %v666_v27, 0.0  ;;  %v696_v27 = vadd.f32 %v695_v9, %v694_v49  ;;  %v739_v35 = vrot.slane %v738_v14, 1 }
 0x144   :  { %2376 = vmatprep.subr.mxu1 %v784_v45  ;;  %v749_v57 = vrot.slane %v748_v44, 4  ;;  %v755_v58 = vsel %vm396_vm3, %v667_v38, 0.0  ;;  %v701_v10 = vadd.f32 %v700_v55, %v699_v42  ;;  %v690_v26 = vrot.slane %v689_v8, 1 }
 0x145   :  { %2377 = vmatpush3.msra.mxu1 %v784_v45  ;;  %v640_v29 = vpop.permute.xlu0 %639  ;;  %v674_v45 = vrot.slane %v673_v30, 2  ;;  %v756_v6 = vrot.slane %v755_v58, 4 }
 0x146   :  { %2378 = vmatprep.subr.mxu1 %v783_v46  ;;  %v668_v52 = vmul.f32 %v640_v29, %v210_v40  ;;  %v750_v12 = vadd.f32 %v749_v57, %v748_v44  ;;  %v702_v28 = vrot.slane %v701_v10, 2  ;;  %v709_v40 = vrot.slane %v708_v24, 2 }
 0x147   :  { %2379 = vmatpush3.msra.mxu1 %v783_v46  ;;  %v681_v46 = vrot.slane %v680_v31, 2  ;;  %v675_v62 = vadd.f32 %v674_v45, %v673_v30  ;;  %v757_v25 = vadd.f32 %v756_v6, %v755_v58  ;;  %v691_v42 = vadd.f32 %v690_v26, %v689_v8 }
 0x148   :  { %2381 = vmatmul.mubr.msk.f32.vlgmr.msra.gmra.mxu1 %vm314_vm1, %v309_v43  ;;  %2399 = vmatprep.subr.mxu1 %v2738_v47  ;;  %v742_v43 = vrot.slane %v741_v32, 4  ;;  %v762_v7 = vsel %vm396_vm3, %v668_v52, 0.0  ;;  %v751_v29 = vrot.slane %v750_v12, 2  ;;  %v777_v45 = vrot.slane %v776_v33, 4 }
 0x149   :  { %2401 = vmatprep.mubr.msk.f32.mxu1 %vm2739_vm2, %v2738_v47  ;;  %v647_v54 = vpop.permute.xlu0 %646  ;;  %v682_v63 = vadd.f32 %v681_v46, %v680_v31  ;;  %v763_v20 = vrot.slane %v762_v7, 4  ;;  %v676_v22 = vrot.slane %v675_v62, 1  ;;  %v721_v31 = vrot.slane %v720_v19, 4 }
 0x14a   :  { %v743_v61 = vadd.f32 %v742_v43, %v741_v32  ;;  %v669_v1 = vmul.f32 %v647_v54, %v211_v53  ;;  %v758_v41 = vrot.slane %v757_v25, 2  ;;  %v703_v43 = vadd.f32 %v702_v28, %v701_v10 }
 0x14b   :  { %v683_v23 = vrot.slane %v682_v63, 1  ;;  %v764_v37 = vadd.f32 %v763_v20, %v762_v7  ;;  %v677_v38 = vadd.f32 %v676_v22, %v675_v62  ;;  %v752_v44 = vadd.f32 %v751_v29, %v750_v12 }
 0x14c   :  { %v744_v16 = vrot.slane %v743_v61, 2  ;;  %v769_v21 = vsel %vm396_vm3, %v669_v1, 0.0  ;;  %v697_v46 = vrot.slane %v696_v27, 1  ;;  %v722_v49 = vadd.f32 %v721_v31, %v720_v19 }
 0x14d   :  { %v770_v32 = vrot.slane %v769_v21, 4  ;;  %v684_v39 = vadd.f32 %v683_v23, %v682_v63  ;;  %v740_v52 = vadd.f32 %v739_v35, %v738_v14  ;;  %v716_v53 = vrot.slane %v715_v36, 2 }
 0x14e   :  { %v745_v30 = vadd.f32 %v744_v16, %v743_v61  ;;  %v765_v54 = vrot.slane %v764_v37, 2  ;;  %v710_v56 = vadd.f32 %v709_v40, %v708_v24  ;;  %v759_v57 = vadd.f32 %v758_v41, %v757_v25  ;;  %v995_v41 = vld [vmem:[%s2810_s30 + $0x18] sm:$0xff] }
 0x14f   :  { %v771_v50 = vadd.f32 %v770_v32, %v769_v21  ;;  %v880_v55 = vsel %vm879_vm4, %v684_v39, %v677_v38  ;;  %v704_v58 = vrot.slane %v703_v43, 1  ;;  %v753_v59 = vrot.slane %v752_v44, 1  ;;  %v862_v32 = vld [vmem:[%s2795_s14] sm:$0xff]  ;;  %s3189_s14 = sld [smem:[#allocation25_spill]] }
 0x150   :  { %v746_v48 = vrot.slane %v745_v30, 1  ;;  %v778_v60 = vadd.f32 %v777_v45, %v776_v33  ;;  %v698_v61 = vadd.f32 %v697_v46, %v696_v27  ;;  %v723_v63 = vrot.slane %v722_v49, 2  ;;  %v1220_v45 = vld [vmem:[%s2805_s24 + $0x18] sm:$0xff] }
 0x151   :  { %v772_v0 = vrot.slane %v771_v50, 2  ;;  %v882_v1 = vsel %vm881_vm5, %v691_v42, %v880_v55  ;;  %v893_v2 = vsel %vm879_vm4, %v740_v52, %v733_v51  ;;  %v717_v3 = vadd.f32 %v716_v53, %v715_v36  ;;  %v994_v42 = vld [vmem:[%s2810_s30 + $0x10] sm:$0xff] }
 0x152   :  { %v747_v62 = vadd.f32 %v746_v48, %v745_v30  ;;  %v766_v4 = vadd.f32 %v765_v54, %v764_v37  ;;  %v711_v5 = vrot.slane %v710_v56, 1  ;;  %v760_v6 = vrot.slane %v759_v57, 1 }
 0x153   :  { %v705_v7 = vadd.f32 %v704_v58, %v703_v43  ;;  %v754_v8 = vadd.f32 %v753_v59, %v752_v44  ;;  %v779_v9 = vrot.slane %v778_v60, 2  ;;  %v884_v10 = vsel %vm883_vm6, %v698_v61, %v882_v1  ;;  %v993_v43 = vld [vmem:[%s2810_s30 + $0x8] sm:$0xff]  ;;  %v992_v44 = vld [vmem:[%s2810_s30] sm:$0xff]  ;;  %s3191_s30 = sld [smem:[#allocation28_spill]] }
 0x154   :  { %v894_v12 = vsel %vm881_vm5, %v747_v62, %v893_v2  ;;  %v724_v13 = vadd.f32 %v723_v63, %v722_v49  ;;  %v773_v14 = vadd.f32 %v772_v0, %v771_v50  ;;  %v718_v16 = vrot.slane %v717_v3, 1  ;;  %v1219_v0 = vld [vmem:[%s2805_s24 + $0x10] sm:$0xff]  ;;  %v1218_v1 = vld [vmem:[%s2805_s24 + $0x8] sm:$0xff]  ;;  %v1217_v2 = vld [vmem:[%s2805_s24] sm:$0xff]  ;;  %s3190_s24 = sld [smem:[#allocation26_spill]] }
 0x155   :  { %v767_v17 = vrot.slane %v766_v4, 1  ;;  %v712_v18 = vadd.f32 %v711_v5, %v710_v56  ;;  %v761_v19 = vadd.f32 %v760_v6, %v759_v57  ;;  %v895_v20 = vsel %vm883_vm6, %v754_v8, %v894_v12  ;;  %v2230_v57 = vld [vmem:[%s3181_s5] ss:$0 sm:$0xff]  ;;  %v214_v6 = vld [vmem:[%s3183_s13 + $0x8] sm:$0xff] }
 0x156   :  { %v780_v21 = vadd.f32 %v779_v9, %v778_v60  ;;  %v886_v22 = vsel %vm885_vm7, %v705_v7, %v884_v10  ;;  %v725_v23 = vrot.slane %v724_v13, 1  ;;  %v774_v24 = vrot.slane %v773_v14, 1  ;;  %v1499_v7 = vld [vmem:[%s3182_s9 + $0x8] sm:$0xff]  ;;  %v213_v8 = vld [vmem:[%s3183_s13] sm:$0xff] }
 0x157   :  { %v719_v26 = vadd.f32 %v718_v16, %v717_v3  ;;  %v768_v27 = vadd.f32 %v767_v17, %v766_v4  ;;  %v896_v28 = vsel %vm885_vm7, %v761_v19, %v895_v20  ;;  %v888_v30 = vsel %vm887_vm8, %v712_v18, %v886_v22  ;;  %v1501_v3 = vld [vmem:[%s3182_s9 + $0x18] sm:$0xff]  ;;  %v1500_v4 = vld [vmem:[%s3182_s9 + $0x10] sm:$0xff]  ;;  %v1498_v9 = vld [vmem:[%s3182_s9] sm:$0xff] }
 0x158   :  { %v781_v31 = vrot.slane %v780_v21, 1  ;;  %v726_v33 = vadd.f32 %v725_v23, %v724_v13  ;;  %v775_v34 = vadd.f32 %v774_v24, %v773_v14  ;;  %v2740_v5 = vmov 0   ;;  %v1497_v10 = vld [vmem:[%s3184_s17] sm:$0x3]  ;;  %v1296_v14 = vld [vmem:[#allocation5] sm:$0xff]  ;;  %v1414_v19 = vld [vmem:[%s3185_s25 + $0x18] sm:$0xff] }
 0x159   :  { %v890_v35 = vsel %vm889_vm9, %v719_v26, %v888_v30  ;;  %v897_v36 = vsel %vm887_vm8, %v768_v27, %v896_v28  ;;  %2568 = vset.pattern.permute.xlu1 %v2740_v5  ;;  %2567 = vset.pattern.permute.xlu0 %v2740_v5  ;;  %v1412_v20 = vld [vmem:[%s3185_s25 + $0x8] sm:$0xff]  ;;  %v2239_v28 = vld [vmem:[%s3186_s29] ss:$0 sm:$0xff] }
 0x15a   :  { %v782_v37 = vadd.f32 %v781_v31, %v780_v21  ;;  %v3011_v38 = vsel %vm891_vm10, %v726_v33, %v890_v35  ;;  %v898_v39 = vsel %vm889_vm9, %v775_v34, %v897_v36  ;;  %1392 = vperm.xlu1 %2568, %v214_v6   ;;  %1387 = vperm.xlu0 %2567, %v213_v8   ;;  %v1411_v21 = vld [vmem:[%s3185_s25] sm:$0xff] }
 0x15c   :  { %v3016_v40 = vsel %vm891_vm10, %v782_v37, %v898_v39 }
 0x1d5   :  { %v1393_v34 = vpop.permute.xlu1 %1392  ;;  %v1388_v37 = vpop.permute.xlu0 %1387 }
 0x200   :  { %v2361_v25 = vpop.f32.mrf.mxu1 }
 0x202   :  { %v387_v29 = vpop.f32.mrf.mxu1 }
 0x203   :  { %2363 = vmatpush3.msra.mxu0 %v387_v29 }
 0x204   :  { %2365 = vmatmul.mubr.msk.f32.vlgmr.msra.gmra.mxu0 %vm396_vm3, %v2925_v11  ;;  %2367 = vmatprep.subr.mxu0 %v2738_v47 }
 0x205   :  { %2368 = vmatpush3.msra.mxu0 %v2361_v25  ;;  %2369 = vmatprep.mubr.msk.f32.mxu0 %vm2739_vm2, %v2738_v47 }
 0x206   :  { %2383 = vmatprep.subr.mxu0 %v862_v32 }
 0x208   :  { %2370 = vmatmul.mubr.msk.f32.vlgmr.msra.gmra.mxu0 %vm396_vm3, %v2928_v15  ;;  %v2382_v49 = vpop.f32.mrf.mxu1 }
 0x209   :  { %2385 = vmatprep.mubr.msk.f32.mxu0 %vm396_vm3, %v3011_v38  ;;  %2384 = vmatpush3.msra.mxu0 %v862_v32 }
 0x20a   :  { %2388 = vmatprep.subr.mxu0 %v995_v41  ;;  %v853_v53 = vpop.f32.mrf.mxu1 }
 0x20c   :  { %2386 = vmatmul.mubr.msk.f32.vlgmr.msra.gmra.mxu0 %vm396_vm3, %v3016_v40 }
 0x20d   :  { %2389 = vmatpush3.msra.mxu0 %v995_v41 }
 0x20e   :  { %2390 = vmatprep.subr.mxu0 %v994_v42 }
 0x20f   :  { %2391 = vmatpush3.msra.mxu0 %v994_v42 }
 0x210   :  { %2392 = vmatprep.subr.mxu0 %v993_v43 }
 0x211   :  { %2393 = vmatpush3.msra.mxu0 %v993_v43  ;;  %v2242_v43 = vld [vmem:[%s3187_s3] ss:$0 sm:$0xff] }
 0x212   :  { %2394 = vmatprep.subr.mxu0 %v992_v44 }
 0x213   :  { %2395 = vmatpush3.msra.mxu0 %v992_v44 }
 0x214   :  { %2409 = vmatprep.subr.mxu0 %v1220_v45 }
 0x2c4   :  { %v466_v46 = vpop.f32.mrf.mxu0 }
 0x2c5   :  { %v854_v55 = vadd.f32 %v853_v53, %v466_v46 }
 0x2c6   :  { %v2366_v48 = vpop.f32.mrf.mxu0 }
 0x2c8   :  { %v539_v50 = vpop.f32.mrf.mxu0 }
 0x2c9   :  { %v859_v52 = vadd.f32 %v2382_v49, %v539_v50 }
 0x2ca   :  { %v2371_v51 = vpop.f32.mrf.mxu0 }
 0x2cc   :  { %v2387_v54 = vpop.f32.mrf.mxu0 }
 0x2cd   :  { %v980_v56 = vadd.f32 %v2387_v54, %v859_v52 }
 0x2ce   :  { %v970_v58 = vpop.f32.mrf.mxu0 }
 0x2cf   :  { %v979_v59 = vadd.f32 %v970_v58, %v854_v55  ;;  %v989_v60 = vadd.f32 %v2230_v57, %v980_v56  ;;  %v1586_v58 = vld [vmem:[%s3188_s8 + $0x18] sm:$0xff] }
 0x2d1   :  { %v988_v61 = vadd.f32 %v2230_v57, %v979_v59  ;;  %v991_v63 = vmax.f32 %v989_v60, 0.0  ;;  %v1585_v60 = vld [vmem:[%s3188_s8 + $0x10] sm:$0xff] }
 0x2d3   :  { %v990_v62 = vmax.f32 %v988_v61, 0.0  ;;  %v1584_v61 = vld [vmem:[%s3188_s8 + $0x8] sm:$0xff] }
 0x2d5   :  { %2396 = vmatprep.mubr.msk.f32.mxu0 %vm314_vm1, %v990_v62 }
 0x2d6   :  { %2397 = vmatmul.mubr.msk.f32.vlgmr.msra.gmra.mxu0 %vm314_vm1, %v991_v63 }
 0x2d7   :  { %2410 = vmatpush3.msra.mxu0 %v1220_v45  ;;  %2417 = vmatprep.mubr.msk.f32.mxu0 %vm314_vm1, %v990_v62  ;;  %v1583_v62 = vld [vmem:[%s3188_s8] sm:$0xff] }
 0x2d8   :  { %2411 = vmatprep.subr.mxu0 %v1219_v0 }
 0x2d9   :  { %2412 = vmatpush3.msra.mxu0 %v1219_v0  ;;  %v1671_v0 = vld [vmem:[%s3189_s14 + $0x18] sm:$0xff] }
 0x2da   :  { %2413 = vmatprep.subr.mxu0 %v1218_v1 }
 0x2db   :  { %2414 = vmatpush3.msra.mxu0 %v1218_v1  ;;  %v1670_v1 = vld [vmem:[%s3189_s14 + $0x10] sm:$0xff] }
 0x2dc   :  { %2415 = vmatprep.subr.mxu0 %v1217_v2 }
 0x2dd   :  { %2416 = vmatpush3.msra.mxu0 %v1217_v2  ;;  %v1669_v2 = vld [vmem:[%s3189_s14 + $0x8] sm:$0xff] }
 0x2de   :  { %2418 = vmatmul.mubr.msk.f32.vlgmr.msra.gmra.mxu0 %vm314_vm1, %v991_v63  ;;  %2436 = vmatprep.subr.mxu0 %v2738_v47 }
 0x2df   :  { %2444 = vmatprep.mubr.msk.f32.mxu0 %vm2739_vm2, %v2738_v47  ;;  %2437 = vmatpush3.msra.mxu0 %v1501_v3  ;;  %v1668_v3 = vld [vmem:[%s3189_s14] sm:$0xff] }
 0x2e0   :  { %2438 = vmatprep.subr.mxu0 %v2738_v47 }
 0x2e1   :  { %2439 = vmatpush3.msra.mxu0 %v1500_v4  ;;  %v1756_v4 = vld [vmem:[%s3190_s24 + $0x18] sm:$0xff] }
 0x2e2   :  { %2440 = vmatprep.subr.mxu0 %v2738_v47 }
 0x2e3   :  { %2441 = vmatpush3.msra.mxu0 %v1499_v7  ;;  %v2244_v7 = vld [vmem:[#allocation7] ss:$0 sm:$0xff] }
 0x2e4   :  { %2442 = vmatprep.subr.mxu0 %v2738_v47 }
 0x2e5   :  { %2443 = vmatpush3.msra.mxu0 %v1498_v9 }
 0x2e6   :  { %2445 = vmatmul.mubr.msk.f32.vlgmr.msra.gmra.mxu0 %vm314_vm1, %v1497_v10  ;;  %2458 = vmatprep.subr.mxu0 %v2738_v47 }
 0x2e7   :  { %2466 = vmatprep.mubr.msk.f32.mxu0 %vm2739_vm2, %v2738_v47  ;;  %2459 = vmatpush3.msra.mxu0 %v1671_v0 }
 0x2e8   :  { %2460 = vmatprep.subr.mxu0 %v2738_v47 }
 0x2e9   :  { %2461 = vmatpush3.msra.mxu0 %v1670_v1 }
 0x2ea   :  { %2462 = vmatprep.subr.mxu0 %v2738_v47 }
 0x2eb   :  { %2463 = vmatpush3.msra.mxu0 %v1669_v2 }
 0x2ec   :  { %2464 = vmatprep.subr.mxu0 %v2738_v47 }
 0x2ed   :  { %2465 = vmatpush3.msra.mxu0 %v1668_v3 }
 0x2ee   :  { %2480 = vmatprep.subr.mxu0 %v2738_v47 }
 0x396   :  { %v2398_v12 = vpop.f32.mrf.mxu0 }
 0x398   :  { %v1068_v13 = vpop.f32.mrf.mxu0 }
 0x399   :  { %2400 = vmatpush3.msra.mxu1 %v1068_v13  ;;  %v1844_v13 = vld [vmem:[%s3191_s30 + $0x18] sm:$0xff] }
 0x39a   :  { %2402 = vmatmul.mubr.msk.f32.vlgmr.msra.gmra.mxu1 %vm396_vm3, %v2925_v11  ;;  %2404 = vmatprep.subr.mxu1 %v2738_v47 }
 0x39b   :  { %2405 = vmatpush3.msra.mxu1 %v2398_v12  ;;  %2406 = vmatprep.mubr.msk.f32.mxu1 %vm2739_vm2, %v2738_v47 }
 0x39c   :  { %2420 = vmatprep.subr.mxu1 %v1296_v14 }
 0x39e   :  { %2407 = vmatmul.mubr.msk.f32.vlgmr.msra.gmra.mxu1 %vm396_vm3, %v2928_v15  ;;  %v2419_v11 = vpop.f32.mrf.mxu0  ;;  %v1413_v15 = vld [vmem:[%s3185_s25 + $0x10] sm:$0xff] }
 0x39f   :  { %2422 = vmatprep.mubr.msk.f32.mxu1 %vm396_vm3, %v3011_v38  ;;  %2421 = vmatpush3.msra.mxu1 %v1296_v14  ;;  %v1843_v14 = vld [vmem:[%s3191_s30 + $0x10] sm:$0xff] }
 0x3a0   :  { %2425 = vmatprep.subr.mxu1 %v2738_v47  ;;  %v1287_v16 = vpop.f32.mrf.mxu0 }
 0x3a2   :  { %2423 = vmatmul.mubr.msk.f32.vlgmr.msra.gmra.mxu1 %vm396_vm3, %v3016_v40 }
 0x3a3   :  { %2433 = vmatprep.mubr.msk.f32.mxu1 %vm2739_vm2, %v2738_v47  ;;  %2426 = vmatpush3.msra.mxu1 %v1414_v19  ;;  %v1755_v19 = vld [vmem:[%s3190_s24 + $0x10] sm:$0xff] }
 0x3a4   :  { %2427 = vmatprep.subr.mxu1 %v2738_v47 }
 0x3a5   :  { %2428 = vmatpush3.msra.mxu1 %v1413_v15  ;;  %v1754_v15 = vld [vmem:[%s3190_s24 + $0x8] sm:$0xff] }
 0x3a6   :  { %v1578_v17 = vpop.f32.mrf.mxu0  ;;  %2429 = vmatprep.subr.mxu1 %v2738_v47 }
 0x3a7   :  { %2430 = vmatpush3.msra.mxu1 %v1412_v20  ;;  %v1579_v48 = vadd.f32 %v2242_v43, %v1578_v17  ;;  %v1841_v17 = vld [vmem:[%s3191_s30] sm:$0xff] }
 0x3a8   :  { %v2446_v18 = vpop.f32.mrf.mxu0  ;;  %2431 = vmatprep.subr.mxu1 %v2738_v47  ;;  %v1753_v20 = vld [vmem:[%s3190_s24] sm:$0xff] }
 0x3a9   :  { %2432 = vmatpush3.msra.mxu1 %v1411_v21  ;;  %2569 = vtanh.f32 %v1579_v48  ;;  %v2246_v21 = vld [vmem:[#allocation8] ss:$0 sm:$0xff]  ;;  %v2087_v48 = vld [vmem:[%s2900_s4 + $0x10] sm:$0xff] }
 0x3aa   :  { %2447 = vmatprep.subr.mxu1 %v2738_v47 }
 0x3b6   :  { %v2570_v63 = vpop.eup %2569 }
 0x45a   :  { %v1143_v22 = vpop.f32.mrf.mxu1 }
 0x45b   :  { %v1288_v29 = vadd.f32 %v1287_v16, %v1143_v22  ;;  %v2240_v16 = vld [vmem:[%s3192_s27] ss:$0 sm:$0xff] }
 0x45c   :  { %v2403_v23 = vpop.f32.mrf.mxu1 }
 0x45e   :  { %v1213_v24 = vpop.f32.mrf.mxu1 }
 0x45f   :  { %v1293_v26 = vadd.f32 %v2419_v11, %v1213_v24  ;;  %v1842_v11 = vld [vmem:[%s3191_s30 + $0x8] sm:$0xff] }
 0x460   :  { %v2408_v25 = vpop.f32.mrf.mxu1 }
 0x462   :  { %v2424_v27 = vpop.f32.mrf.mxu1 }
 0x463   :  { %v1373_v30 = vadd.f32 %v2424_v27, %v1293_v26  ;;  %v1840_v26 = vld [vmem:[%s3193_s0 + $0x18] sm:$0xff]  ;;  %v1839_v27 = vld [vmem:[%s3193_s0 + $0x10] sm:$0xff] }
 0x464   :  { %v1363_v31 = vpop.f32.mrf.mxu1 }
 0x465   :  { %v1382_v32 = vadd.f32 %v2239_v28, %v1373_v30  ;;  %v1372_v33 = vadd.f32 %v1363_v31, %v1288_v29  ;;  %v1838_v30 = vld [vmem:[%s3193_s0 + $0x8] sm:$0xff]  ;;  %v1837_v31 = vld [vmem:[%s3193_s0] sm:$0xff] }
 0x467   :  { %v1381_v35 = vadd.f32 %v2239_v28, %v1372_v33  ;;  %v1384_v36 = vmax.f32 %v1382_v32, 0.0  ;;  %v2248_v32 = vld [vmem:[#allocation10] ss:$0 sm:$0xff] }
 0x469   :  { %v1396_v38 = vmul.f32 %v1393_v34, %v1384_v36  ;;  %v1383_v39 = vmax.f32 %v1381_v35, 0.0  ;;  %v2003_v36 = vld [vmem:[%s3194_s11 + $0x18] sm:$0xff] }
 0x46b   :  { %v1404_v40 = vsel %vm314_vm1, %v1396_v38, 0.0  ;;  %v1395_v41 = vmul.f32 %v1388_v37, %v1383_v39  ;;  %v2002_v37 = vld [vmem:[%s3194_s11 + $0x10] sm:$0xff]  ;;  %v2001_v38 = vld [vmem:[%s3194_s11 + $0x8] sm:$0xff]  ;;  %v2000_v39 = vld [vmem:[%s3194_s11] sm:$0xff] }
 0x46c   :  { %v1405_v42 = vrot.slane %v1404_v40, 4 }
 0x46d   :  { %v1397_v44 = vsel %vm314_vm1, %v1395_v41, 0.0 }
 0x46e   :  { %v1406_v45 = vadd.f32 %v1405_v42, %v1404_v40  ;;  %v1398_v46 = vrot.slane %v1397_v44, 4  ;;  %v2088_v40 = vld [vmem:[%s2900_s4 + $0x18] sm:$0xff]  ;;  %v2252_v42 = vld [vmem:[%s3195_s15] ss:$0 sm:$0xff] }
 0x470   :  { %v1407_v49 = vrot.slane %v1406_v45, 2  ;;  %v1399_v50 = vadd.f32 %v1398_v46, %v1397_v44 }
 0x472   :  { %v1408_v51 = vadd.f32 %v1407_v49, %v1406_v45  ;;  %v1400_v52 = vrot.slane %v1399_v50, 2  ;;  %v2086_v49 = vld [vmem:[%s2900_s4 + $0x8] sm:$0xff] }
 0x474   :  { %v1409_v53 = vrot.slane %v1408_v51, 1  ;;  %v1401_v54 = vadd.f32 %v1400_v52, %v1399_v50  ;;  %v2085_v50 = vld [vmem:[%s2900_s4] sm:$0xff] }
 0x476   :  { %v1402_v55 = vrot.slane %v1401_v54, 1  ;;  %v1410_v56 = vadd.f32 %v1409_v53, %v1408_v51  ;;  %v2253_v51 = vld [vmem:[%s2895_s21] ss:$0 sm:$0xff] }
 0x478   :  { %v1403_v57 = vadd.f32 %v1402_v55, %v1401_v54 }
 0x47a   :  { %v1424_v59 = vsel %vm879_vm4, %v1410_v56, %v1403_v57  ;;  %v2255_v56 = vld [vmem:[%s2905_s20] ss:$0 sm:$0xff] }
 0x47b   :  { %2434 = vmatmul.mubr.msk.f32.vlgmr.msra.gmra.mxu1 %vm314_vm1, %v1424_v59 }
 0x47c   :  { %2448 = vmatpush3.msra.mxu1 %v1586_v58  ;;  %2455 = vmatprep.mubr.msk.f32.mxu1 %vm2739_vm2, %v2738_v47 }
 0x47d   :  { %2449 = vmatprep.subr.mxu1 %v2738_v47 }
 0x47e   :  { %2450 = vmatpush3.msra.mxu1 %v1585_v60 }
 0x47f   :  { %2451 = vmatprep.subr.mxu1 %v2738_v47 }
 0x480   :  { %2452 = vmatpush3.msra.mxu1 %v1584_v61 }
 0x481   :  { %2453 = vmatprep.subr.mxu1 %v2738_v47 }
 0x482   :  { %2454 = vmatpush3.msra.mxu1 %v1583_v62 }
 0x483   :  { %2456 = vmatmul.mubr.msk.f32.vlgmr.msra.gmra.mxu1 %vm314_vm1, %v2570_v63  ;;  %2469 = vmatprep.subr.mxu1 %v2738_v47 }
 0x484   :  { %2477 = vmatprep.mubr.msk.f32.mxu1 %vm2739_vm2, %v2738_v47  ;;  %2470 = vmatpush3.msra.mxu1 %v1756_v4 }
 0x485   :  { %2471 = vmatprep.subr.mxu1 %v2738_v47 }
 0x486   :  { %2472 = vmatpush3.msra.mxu1 %v1755_v19 }
 0x487   :  { %2473 = vmatprep.subr.mxu1 %v2738_v47 }
 0x488   :  { %2474 = vmatpush3.msra.mxu1 %v1754_v15 }
 0x489   :  { %2475 = vmatprep.subr.mxu1 %v2738_v47 }
 0x48a   :  { %2476 = vmatpush3.msra.mxu1 %v1753_v20 }
 0x48b   :  { %2491 = vmatprep.subr.mxu1 %v2738_v47 }
 0x53b   :  { %v1493_v5 = vpop.f32.mrf.mxu1 }
 0x53c   :  { %v1494_v18 = vadd.f32 %v2240_v16, %v1493_v5 }
 0x53d   :  { %v2435_v6 = vpop.f32.mrf.mxu1 }
 0x543   :  { %v1663_v8 = vpop.f32.mrf.mxu1 }
 0x544   :  { %v1664_v9 = vadd.f32 %v2244_v7, %v1663_v8 }
 0x545   :  { %v2457_v10 = vpop.f32.mrf.mxu1 }
 0x546   :  { %v1667_v12 = vmax.f32 %v1664_v9, 0.0 }
 0x548   :  { %2467 = vmatmul.mubr.msk.f32.vlgmr.msra.gmra.mxu0 %vm314_vm1, %v1667_v12 }
 0x549   :  { %2481 = vmatpush3.msra.mxu0 %v1844_v13  ;;  %2488 = vmatprep.mubr.msk.f32.mxu0 %vm2739_vm2, %v2738_v47 }
 0x54a   :  { %2482 = vmatprep.subr.mxu0 %v2738_v47 }
 0x54b   :  { %2483 = vmatpush3.msra.mxu0 %v1843_v14 }
 0x54c   :  { %2484 = vmatprep.subr.mxu0 %v2738_v47 }
 0x54d   :  { %2485 = vmatpush3.msra.mxu0 %v1842_v11 }
 0x54e   :  { %2486 = vmatprep.subr.mxu0 %v2738_v47 }
 0x54f   :  { %2487 = vmatpush3.msra.mxu0 %v1841_v17 }
 0x550   :  { %2489 = vmatmul.mubr.msk.f32.vlgmr.msra.gmra.mxu0 %vm314_vm1, %v1494_v18  ;;  %2502 = vmatprep.subr.mxu0 %v2738_v47 }
 0x551   :  { %2510 = vmatprep.mubr.msk.f32.mxu0 %vm2739_vm2, %v2738_v47  ;;  %2503 = vmatpush3.msra.mxu0 %v2003_v36 }
 0x552   :  { %2504 = vmatprep.subr.mxu0 %v2738_v47 }
 0x553   :  { %2505 = vmatpush3.msra.mxu0 %v2002_v37 }
 0x554   :  { %2506 = vmatprep.subr.mxu0 %v2738_v47 }
 0x555   :  { %2507 = vmatpush3.msra.mxu0 %v2001_v38 }
 0x556   :  { %2508 = vmatprep.subr.mxu0 %v2738_v47 }
 0x557   :  { %2509 = vmatpush3.msra.mxu0 %v2000_v39 }
 0x608   :  { %v1748_v22 = vpop.f32.mrf.mxu0 }
 0x609   :  { %v1749_v23 = vadd.f32 %v2246_v21, %v1748_v22 }
 0x60a   :  { %v2468_v24 = vpop.f32.mrf.mxu0 }
 0x60b   :  { %v1752_v25 = vmax.f32 %v1749_v23, 0.0 }
 0x60d   :  { %2478 = vmatmul.mubr.msk.f32.vlgmr.msra.gmra.mxu1 %vm314_vm1, %v1752_v25 }
 0x60e   :  { %2492 = vmatpush3.msra.mxu1 %v1840_v26  ;;  %2499 = vmatprep.mubr.msk.f32.mxu1 %vm2739_vm2, %v2738_v47 }
 0x60f   :  { %2493 = vmatprep.subr.mxu1 %v2738_v47 }
 0x610   :  { %v1914_v28 = vpop.f32.mrf.mxu0  ;;  %2494 = vmatpush3.msra.mxu1 %v1839_v27 }
 0x611   :  { %2495 = vmatprep.subr.mxu1 %v2738_v47 }
 0x612   :  { %v2490_v29 = vpop.f32.mrf.mxu0  ;;  %2496 = vmatpush3.msra.mxu1 %v1838_v30 }
 0x613   :  { %2497 = vmatprep.subr.mxu1 %v2738_v47 }
 0x614   :  { %2498 = vmatpush3.msra.mxu1 %v1837_v31 }
 0x615   :  { %2513 = vmatprep.subr.mxu1 %v2738_v47 }
 0x6cd   :  { %v1833_v33 = vpop.f32.mrf.mxu1 }
 0x6ce   :  { %v1834_v34 = vadd.f32 %v2248_v32, %v1833_v33 }
 0x6cf   :  { %v2479_v35 = vpop.f32.mrf.mxu1 }
 0x6d0   :  { %2500 = vmatmul.mubr.msk.f32.vlgmr.msra.gmra.mxu1 %vm314_vm1, %v1834_v34 }
 0x6d1   :  { %2521 = vmatprep.mubr.msk.f32.mxu1 %vm2739_vm2, %v2738_v47  ;;  %2514 = vmatpush3.msra.mxu1 %v2088_v40 }
 0x6d2   :  { %2515 = vmatprep.subr.mxu1 %v2738_v47 }
 0x6d3   :  { %2516 = vmatpush3.msra.mxu1 %v2087_v48 }
 0x6d4   :  { %2517 = vmatprep.subr.mxu1 %v2738_v47 }
 0x6d5   :  { %2518 = vmatpush3.msra.mxu1 %v2086_v49 }
 0x6d6   :  { %2519 = vmatprep.subr.mxu1 %v2738_v47 }
 0x6d7   :  { %2520 = vmatpush3.msra.mxu1 %v2085_v50 }
 0x790   :  { %v1987_v41 = vpop.f32.mrf.mxu1 }
 0x791   :  { %v1988_v43 = vadd.f32 %v1987_v41, %v1914_v28 }
 0x792   :  { %v2501_v44 = vpop.f32.mrf.mxu1 }
 0x793   :  { %v1998_v45 = vadd.f32 %v2252_v42, %v1988_v43 }
 0x795   :  { %v1999_v46 = vmax.f32 %v1998_v45, 0.0 }
 0x797   :  { %2511 = vmatmul.mubr.msk.f32.vlgmr.msra.gmra.mxu0 %vm314_vm1, %v1999_v46 }
 0x857   :  { %v2080_v52 = vpop.f32.mrf.mxu0 }
 0x858   :  { %v2081_v53 = vadd.f32 %v2253_v51, %v2080_v52 }
 0x859   :  { %v2512_v54 = vpop.f32.mrf.mxu0 }
 0x85a   :  { %v2084_v55 = vmax.f32 %v2081_v53, 0.0 }
 0x85c   :  { %2522 = vmatmul.mubr.msk.f32.vlgmr.msra.gmra.mxu1 %vm314_vm1, %v2084_v55 }
 0x91c   :  { %v2165_v57 = vpop.f32.mrf.mxu1 }
 0x91d   :  { %v2166_v58 = vadd.f32 %v2255_v56, %v2165_v57 }
 0x91e   :  { %v2523_v59 = vpop.f32.mrf.mxu1 }
 0x91f   :  { %2169 = vst [vmem:[#allocation11] sm:$0x3] %v2166_v58 }
 0x920   :  { %2682 = shalt.err (!%p2679_p1)
}
 0x921   :  { %2179 = dma.vmem_to_hbm [thread:$0]  %s2177_s18, 32, %s2910_s19, [#allocation4]  }
 0x922   :  { %2697 = dma.done.wait [#allocation4], 32  }
 0x923   :  { %2698 = vsyncadd [#allocation4], 4294967264 }
 0x924   :  { %2183 = vsyncpa [#allocation3], 1 }
 0x925   :  { %2184 = vsyncpa [#allocation6], 1 }
 0x926   :  { %2185 = vsyncpa [#allocation9], 1 }
 0x927   :  { %2186 = vsyncpa [#allocation4], 1 }

</bundles_post_ra>
